<compile_context>
chip_gen: v7x
topology: tpu7x:2x2x1
jax: 0.10.0
libtpu: 0.0.40
codegen_flags: <defaults>
</compile_context>

<pallas_src>
import functools

import jax
import jax.numpy as jnp
from jax import lax
from jax.experimental import pallas as pl
from jax.experimental.pallas import tpu as pltpu

_LANE = 128
_SUBLANE = 8

# Lazily probed kernel config: (use_hw_prng, single_buffer_weights).
_CONFIG = None


def _round_up(x, m):
    return ((x + m - 1) // m) * m


def _cdiv(a, b):
    return -(-a // b)


def _vmem_limit_bytes():
    """Generation-aware scoped-VMEM limit (~75% of physical, capped at 100 MiB)."""
    try:
        cap = int(pltpu.get_tpu_info().vmem_capacity_bytes)
    except Exception:
        cap = 64 * 1024 * 1024
    return max(min(cap * 3 // 4, 100 * 1024 * 1024), 32 * 1024 * 1024)


# ---------------------------------------------------------------------------
# Dropout keep-masks.
# Keep probability is exactly 1 - thr31 / 2**31 = 1 - p; the 1/(1-p) inverted
# dropout scale is folded into w2/w3 at param-prep time so the in-kernel
# dropout is a pure select.
# ---------------------------------------------------------------------------
def _hw_keep_mask(shape, thr31):
    """Hardware-PRNG keep mask: one random-bits draw + one compare."""
    raw = pltpu.prng_random_bits(shape)
    if raw.dtype != jnp.uint32:
        raw = pltpu.bitcast(raw, jnp.uint32)
    bits31 = (raw >> 1).astype(jnp.int32)          # [0, 2^31): signed-safe compare
    return bits31 >= jnp.int32(thr31)


def _fmix32(x):
    """murmur3-style 32-bit finalizer (full avalanche), uint32 in/out."""
    x = x ^ (x >> 16)
    x = x * jnp.uint32(0x7FEB352D)
    x = x ^ (x >> 15)
    x = x * jnp.uint32(0x846CA68B)
    x = x ^ (x >> 16)
    return x


def _hash_base(shape, row_offset, seed_u32):
    """Shared per-element hash base (computed once, reused by both layers)."""
    r = lax.broadcasted_iota(jnp.int32, shape, 0) + row_offset
    c = lax.broadcasted_iota(jnp.int32, shape, 1)
    idx = (r * jnp.int32(shape[1]) + c).astype(jnp.uint32)
    return (idx * jnp.uint32(0x9E3779B1)) ^ (seed_u32 * jnp.uint32(0x85EBCA6B))


def _hash_keep_mask(base, salt, thr31):
    bits = _fmix32(base ^ jnp.uint32(salt))
    return (bits >> 1).astype(jnp.int32) >= jnp.int32(thr31)


# ---------------------------------------------------------------------------
# Fused MLP kernel.
# ---------------------------------------------------------------------------
def _mlp_dropout_kernel(seed_ref, x_ref, w1_ref, b1_ref, w2_ref, b2_ref,
                        w3_ref, b3_ref, o_ref, *, apply_dropout, thr31,
                        block_rows, use_hw_prng):
    w_dtype = w2_ref.dtype

    # fc1 -> relu -> dropout1   (bf16 matmul, f32 accumulate)
    h = jnp.dot(x_ref[...], w1_ref[...],
                preferred_element_type=jnp.float32) + b1_ref[...]
    h = jnp.maximum(h, 0.0)

    if apply_dropout:
        if use_hw_prng:
            pltpu.prng_seed(seed_ref[0], pl.program_id(0))
            keep1 = _hw_keep_mask(h.shape, thr31)
        else:
            base = _hash_base(h.shape, pl.program_id(0) * block_rows,
                              seed_ref[0].astype(jnp.uint32))
            keep1 = _hash_keep_mask(base, 0x1B873593, thr31)
        h = jnp.where(keep1, h, 0.0)          # 1/(1-p) already folded into w2

    # fc2 -> relu -> dropout2
    h = jnp.dot(h.astype(w_dtype), w2_ref[...],
                preferred_element_type=jnp.float32) + b2_ref[...]
    h = jnp.maximum(h, 0.0)

    if apply_dropout:
        if use_hw_prng:
            keep2 = _hw_keep_mask(h.shape, thr31)
        else:
            keep2 = _hash_keep_mask(base, 0x52DCE729, thr31)
        h = jnp.where(keep2, h, 0.0)          # 1/(1-p) already folded into w3

    # fc3
    y = jnp.dot(h.astype(w_dtype), w3_ref[...],
                preferred_element_type=jnp.float32) + b3_ref[...]
    o_ref[...] = y.astype(o_ref.dtype)


# ---------------------------------------------------------------------------
# Param preparation & forward wrapper.
# ---------------------------------------------------------------------------
def prepare_params(params, *, p, training, compute_dtype=jnp.bfloat16,
                   lane=_LANE):
    """One-time prep: pad input/hidden/output dims to lane multiples (zero
    rows / cols / bias entries), fold the inverted-dropout 1/(1-p) scale into
    w2/w3, cast weights to the bf16 matmul dtype (biases stay f32)."""
    in_size, hid = params["w1"].shape
    out = params["w3"].shape[1]
    in_p = _round_up(in_size, lane)
    hid_p = _round_up(hid, lane)
    out_p = _round_up(out, lane)

    scale = 1.0 / (1.0 - p) if (training and 0.0 < p < 1.0) else 1.0

    w1 = jnp.pad(params["w1"], ((0, in_p - in_size), (0, hid_p - hid)))
    b1 = jnp.pad(params["b1"], (0, hid_p - hid)).reshape(1, hid_p)
    w2 = jnp.pad(params["w2"] * scale, ((0, hid_p - hid), (0, hid_p - hid)))
    b2 = jnp.pad(params["b2"], (0, hid_p - hid)).reshape(1, hid_p)
    w3 = jnp.pad(params["w3"] * scale, ((0, hid_p - hid), (0, out_p - out)))
    b3 = jnp.pad(params["b3"], (0, out_p - out)).reshape(1, out_p)

    return {
        "w1": w1.astype(compute_dtype), "b1": b1.astype(jnp.float32),
        "w2": w2.astype(compute_dtype), "b2": b2.astype(jnp.float32),
        "w3": w3.astype(compute_dtype), "b3": b3.astype(jnp.float32),
        "in_size": in_size, "in_pad": in_p, "out_size": out,
        "p": float(p), "training": bool(training),
        "compute_dtype": compute_dtype,
    }


def _resident_spec(shape, single_buffer):
    """Weight/bias BlockSpec: constant index_map (VMEM-resident). With
    single_buffer, request Buffered(1) so resident weights are not
    double-buffered."""
    if single_buffer:
        return pl.BlockSpec(shape, lambda i, s: (0, 0),
                            pipeline_mode=pl.Buffered(1))
    return pl.BlockSpec(shape, lambda i, s: (0, 0))


def nn_dropout_forward(x, prepared, *, p, training=True, seed=0,
                       block_rows=512):
    """Forward pass of NN_Dropout as one fused Pallas call, tiled over batch."""
    if bool(training) != prepared["training"] or abs(float(p) - prepared["p"]) > 1e-12:
        raise ValueError("params were prepared with a different (p, training); "
                         "call prepare_params() again.")

    B, in_size = x.shape
    assert in_size == prepared["in_size"], "input feature size mismatch"
    in_p = prepared["in_pad"]
    hid_p = prepared["w1"].shape[1]
    out_p = prepared["w3"].shape[1]
    out_size = prepared["out_size"]
    out_dtype = x.dtype

    # Batch tiling: big tiles amortize per-step overhead; split into >=2 grid
    # steps whenever possible so both v7x TensorCores get work on the
    # "parallel" axis.
    tm = min(block_rows, _round_up(B, _SUBLANE))
    if _round_up(B, _SUBLANE) > _SUBLANE:
        tm = min(tm, _round_up(_cdiv(B, 2), _SUBLANE))
    b_pad = _round_up(B, tm)
    grid = (b_pad // tm,)

    x_p = x
    if b_pad != B or in_p != in_size:
        x_p = jnp.pad(x, ((0, b_pad - B), (0, in_p - in_size)))
    x_p = x_p.astype(prepared["compute_dtype"])

    apply_dropout = bool(training) and float(p) > 0.0
    thr31 = min(int(round(float(p) * (1 << 31))), (1 << 31) - 1)

    seed_arr = jnp.asarray([seed], dtype=jnp.int32)

    w_bytes = prepared["w1"].dtype.itemsize
    flops = 2 * b_pad * (in_p * hid_p + hid_p * hid_p + hid_p * out_p)
    bytes_accessed = (w_bytes * (b_pad * in_p + in_p * hid_p + hid_p * hid_p
                                 + hid_p * out_p)
                      + 4 * (2 * hid_p + out_p + b_pad * out_p))

    def run(use_hw_prng, single_buffer):
        kernel = functools.partial(
            _mlp_dropout_kernel, apply_dropout=apply_dropout, thr31=thr31,
            block_rows=tm, use_hw_prng=use_hw_prng)
        return pl.pallas_call(
            kernel,
            out_shape=jax.ShapeDtypeStruct((b_pad, out_p), out_dtype),
            grid_spec=pltpu.PrefetchScalarGridSpec(
                num_scalar_prefetch=1,
                grid=grid,
                in_specs=[
                    pl.BlockSpec((tm, in_p), lambda i, s: (i, 0)),   # x tile
                    _resident_spec((in_p, hid_p), single_buffer),    # w1
                    _resident_spec((1, hid_p), single_buffer),       # b1
                    _resident_spec((hid_p, hid_p), single_buffer),   # w2
                    _resident_spec((1, hid_p), single_buffer),       # b2
                    _resident_spec((hid_p, out_p), single_buffer),   # w3
                    _resident_spec((1, out_p), single_buffer),       # b3
                ],
                out_specs=pl.BlockSpec((tm, out_p), lambda i, s: (i, 0)),
            ),
            compiler_params=pltpu.CompilerParams(
                dimension_semantics=("parallel",),
                vmem_limit_bytes=_vmem_limit_bytes()),
            cost_estimate=pl.CostEstimate(flops=flops, transcendentals=0,
                                          bytes_accessed=bytes_accessed),
        )(seed_arr, x_p, prepared["w1"], prepared["b1"], prepared["w2"],
          prepared["b2"], prepared["w3"], prepared["b3"])

    global _CONFIG
    if _CONFIG is not None:
        y_pad = run(*_CONFIG)
    else:
        # Probe the preferred config once (hardware PRNG + single-buffered
        # weights) and fall back gracefully if this JAX/Pallas build rejects it.
        if apply_dropout:
            candidates = ((True, True), (True, False), (False, True), (False, False))
        else:
            candidates = ((False, True), (False, False))
        y_pad = None
        last_err = None
        for cfg in candidates:
            try:
                y_pad = run(*cfg)
                jax.block_until_ready(y_pad)
                if apply_dropout:   # only cache once the PRNG path was exercised
                    _CONFIG = cfg
                break
            except Exception as e:   # noqa: BLE001 - probe next config
                last_err = e
        if y_pad is None:
            raise last_err

    return y_pad[:B, :out_size]


def init_params(key, input_size, hidden_size, output_size):
    """nn.Linear-style init (uniform +/- 1/sqrt(fan_in)); weights stored
    transposed relative to PyTorch, i.e. (in_features, out_features)."""
    ks = jax.random.split(key, 6)

    def linear(kw, kb, fan_in, fan_out):
        bound = 1.0 / jnp.sqrt(jnp.float32(fan_in))
        w = jax.random.uniform(kw, (fan_in, fan_out), jnp.float32,
                               minval=-bound, maxval=bound)
        b = jax.random.uniform(kb, (fan_out,), jnp.float32,
                               minval=-bound, maxval=bound)
        return w, b

    w1, b1 = linear(ks[0], ks[1], input_size, hidden_size)
    w2, b2 = linear(ks[2], ks[3], hidden_size, hidden_size)
    w3, b3 = linear(ks[4], ks[5], hidden_size, output_size)
    return {"w1": w1, "b1": b1, "w2": w2, "b2": b2, "w3": w3, "b3": b3}


if __name__ == "__main__":
    input_size, hidden_size, output_size = 16, 32, 4
    batch = 8
    dropout_p = 0.5

    key = jax.random.PRNGKey(0)
    k_params, k_x = jax.random.split(key)
    params = init_params(k_params, input_size, hidden_size, output_size)
    x = jax.random.normal(k_x, (batch, input_size), jnp.float32)

    prep_train = prepare_params(params, p=dropout_p, training=True)
    prep_eval = prepare_params(params, p=dropout_p, training=False)

    # Training-mode forward (in-kernel inverted dropout).
    y_train = nn_dropout_forward(x, prep_train, p=dropout_p, training=True,
                                 seed=42)
    jax.block_until_ready(y_train)
    # Same seed -> identical masks (determinism check).
    y_train2 = nn_dropout_forward(x, prep_train, p=dropout_p, training=True,
                                  seed=42)
    jax.block_until_ready(y_train2)

    # Eval-mode forward (dropout = identity); check vs. pure-JAX f32 reference
    # (kernel runs its matmuls in bf16, hence the loose tolerance).
    y_eval = nn_dropout_forward(x, prep_eval, p=dropout_p, training=False)
    jax.block_until_ready(y_eval)

    h = jnp.maximum(x @ params["w1"] + params["b1"], 0.0)
    h = jnp.maximum(h @ params["w2"] + params["b2"], 0.0)
    y_ref = h @ params["w3"] + params["b3"]

    assert y_eval.shape == (batch, output_size)
    assert jnp.allclose(y_eval, y_ref, atol=5e-2, rtol=5e-2), \
        float(jnp.max(jnp.abs(y_eval - y_ref)))
    assert y_train.shape == (batch, output_size)
    assert jnp.all(jnp.isfinite(y_train))
    assert jnp.array_equal(y_train, y_train2)

    print("KERNEL_OK")
</pallas_src>

<mosaic_0001>
module attributes {stable_mosaic.version = 11 : i64} {
  func.func @_mlp_dropout_kernel(%arg0: i32, %arg1: memref<1xi32, #tpu.memory_space<smem>>, %arg2: memref<8x128xbf16, #tpu.memory_space<vmem>>, %arg3: memref<128x128xbf16, #tpu.memory_space<vmem>>, %arg4: memref<1x128xf32, #tpu.memory_space<vmem>>, %arg5: memref<128x128xbf16, #tpu.memory_space<vmem>>, %arg6: memref<1x128xf32, #tpu.memory_space<vmem>>, %arg7: memref<128x128xbf16, #tpu.memory_space<vmem>>, %arg8: memref<1x128xf32, #tpu.memory_space<vmem>>, %arg9: memref<8x128xf32, #tpu.memory_space<vmem>>) attributes {dimension_semantics = [#tpu.dimension_semantics<parallel>], iteration_bounds = array<i64: 1>, scalar_prefetch = 1 : i64, scratch_operands = 0 : i64, tpu.core_type = #tpu.core_type<tc>, window_params = [{transform_indices = @transform_0, window_bounds = array<i64: 8, 128>}, {pipeline_mode = #tpu.pipeline_mode<synchronous>, transform_indices = @transform_1, window_bounds = array<i64: 128, 128>}, {pipeline_mode = #tpu.pipeline_mode<synchronous>, transform_indices = @transform_2, window_bounds = array<i64: 1, 128>}, {pipeline_mode = #tpu.pipeline_mode<synchronous>, transform_indices = @transform_3, window_bounds = array<i64: 128, 128>}, {pipeline_mode = #tpu.pipeline_mode<synchronous>, transform_indices = @transform_4, window_bounds = array<i64: 1, 128>}, {pipeline_mode = #tpu.pipeline_mode<synchronous>, transform_indices = @transform_5, window_bounds = array<i64: 128, 128>}, {pipeline_mode = #tpu.pipeline_mode<synchronous>, transform_indices = @transform_6, window_bounds = array<i64: 1, 128>}, {transform_indices = @transform_7, window_bounds = array<i64: 8, 128>}]} {
    %c0 = arith.constant 0 : index
    %c0_0 = arith.constant 0 : index
    %0 = vector.load %arg2[%c0, %c0_0] : memref<8x128xbf16, #tpu.memory_space<vmem>>, vector<8x128xbf16>
    %c0_1 = arith.constant 0 : index
    %c0_2 = arith.constant 0 : index
    %1 = vector.load %arg3[%c0_1, %c0_2] : memref<128x128xbf16, #tpu.memory_space<vmem>>, vector<128x128xbf16>
    %cst = arith.constant dense<0.000000e+00> : vector<8x128xf32>
    %2 = tpu.matmul %0, %1, %cst {dimension_numbers = #tpu.dot_dimension_numbers<[1], [0], [0], [1], [0, 0, 1, 1], [], []>} : vector<8x128xbf16>, vector<128x128xbf16>, vector<8x128xf32> -> vector<8x128xf32>
    %c0_3 = arith.constant 0 : index
    %c0_4 = arith.constant 0 : index
    %3 = vector.load %arg4[%c0_3, %c0_4] : memref<1x128xf32, #tpu.memory_space<vmem>>, vector<1x128xf32>
    %4 = vector.broadcast %3 : vector<1x128xf32> to vector<8x128xf32>
    %5 = arith.addf %2, %4 : vector<8x128xf32>
    %cst_5 = arith.constant 0.000000e+00 : f32
    %6 = vector.broadcast %cst_5 : f32 to vector<8x128xf32>
    %7 = arith.maximumf %5, %6 : vector<8x128xf32>
    %c0_6 = arith.constant 0 : index
    %8 = memref.load %arg1[%c0_6] : memref<1xi32, #tpu.memory_space<smem>>
    "tpu.prng_set_seed_32"(%8, %arg0) : (i32, i32) -> ()
    %9 = "tpu.prng_random_bits"() : () -> vector<8x128xi32>
    %10 = tpu.bitcast %9 : vector<8x128xi32> -> vector<8x128xi32>
    %c1_i32 = arith.constant 1 : i32
    %11 = vector.broadcast %c1_i32 : i32 to vector<8x128xi32>
    %12 = arith.shrui %10, %11 : vector<8x128xi32>
    %c1073741824_i32 = arith.constant 1073741824 : i32
    %13 = vector.broadcast %c1073741824_i32 : i32 to vector<8x128xi32>
    %14 = arith.cmpi sge, %12, %13 : vector<8x128xi32>
    %cst_7 = arith.constant 0.000000e+00 : f32
    %15 = vector.broadcast %cst_7 : f32 to vector<8x128xf32>
    %16 = arith.select %14, %7, %15 : vector<8x128xi1>, vector<8x128xf32>
    %17 = arith.truncf %16 : vector<8x128xf32> to vector<8x128xbf16>
    %c0_8 = arith.constant 0 : index
    %c0_9 = arith.constant 0 : index
    %18 = vector.load %arg5[%c0_8, %c0_9] : memref<128x128xbf16, #tpu.memory_space<vmem>>, vector<128x128xbf16>
    %cst_10 = arith.constant dense<0.000000e+00> : vector<8x128xf32>
    %19 = tpu.matmul %17, %18, %cst_10 {dimension_numbers = #tpu.dot_dimension_numbers<[1], [0], [0], [1], [0, 0, 1, 1], [], []>} : vector<8x128xbf16>, vector<128x128xbf16>, vector<8x128xf32> -> vector<8x128xf32>
    %c0_11 = arith.constant 0 : index
    %c0_12 = arith.constant 0 : index
    %20 = vector.load %arg6[%c0_11, %c0_12] : memref<1x128xf32, #tpu.memory_space<vmem>>, vector<1x128xf32>
    %21 = vector.broadcast %20 : vector<1x128xf32> to vector<8x128xf32>
    %22 = arith.addf %19, %21 : vector<8x128xf32>
    %cst_13 = arith.constant 0.000000e+00 : f32
    %23 = vector.broadcast %cst_13 : f32 to vector<8x128xf32>
    %24 = arith.maximumf %22, %23 : vector<8x128xf32>
    %25 = "tpu.prng_random_bits"() : () -> vector<8x128xi32>
    %26 = tpu.bitcast %25 : vector<8x128xi32> -> vector<8x128xi32>
    %c1_i32_14 = arith.constant 1 : i32
    %27 = vector.broadcast %c1_i32_14 : i32 to vector<8x128xi32>
    %28 = arith.shrui %26, %27 : vector<8x128xi32>
    %c1073741824_i32_15 = arith.constant 1073741824 : i32
    %29 = vector.broadcast %c1073741824_i32_15 : i32 to vector<8x128xi32>
    %30 = arith.cmpi sge, %28, %29 : vector<8x128xi32>
    %cst_16 = arith.constant 0.000000e+00 : f32
    %31 = vector.broadcast %cst_16 : f32 to vector<8x128xf32>
    %32 = arith.select %30, %24, %31 : vector<8x128xi1>, vector<8x128xf32>
    %33 = arith.truncf %32 : vector<8x128xf32> to vector<8x128xbf16>
    %c0_17 = arith.constant 0 : index
    %c0_18 = arith.constant 0 : index
    %34 = vector.load %arg7[%c0_17, %c0_18] : memref<128x128xbf16, #tpu.memory_space<vmem>>, vector<128x128xbf16>
    %cst_19 = arith.constant dense<0.000000e+00> : vector<8x128xf32>
    %35 = tpu.matmul %33, %34, %cst_19 {dimension_numbers = #tpu.dot_dimension_numbers<[1], [0], [0], [1], [0, 0, 1, 1], [], []>} : vector<8x128xbf16>, vector<128x128xbf16>, vector<8x128xf32> -> vector<8x128xf32>
    %c0_20 = arith.constant 0 : index
    %c0_21 = arith.constant 0 : index
    %36 = vector.load %arg8[%c0_20, %c0_21] : memref<1x128xf32, #tpu.memory_space<vmem>>, vector<1x128xf32>
    %37 = vector.broadcast %36 : vector<1x128xf32> to vector<8x128xf32>
    %38 = arith.addf %35, %37 : vector<8x128xf32>
    %c0_22 = arith.constant 0 : index
    %c0_23 = arith.constant 0 : index
    %39 = vector.load %arg9[%c0_22, %c0_23] : memref<8x128xf32, #tpu.memory_space<vmem>>, vector<8x128xf32>
    tpu.vector_store %arg9[%c0_22, %c0_23], %38 {strides = array<i32>} : memref<8x128xf32, #tpu.memory_space<vmem>>, vector<8x128xf32>,
    return
  }
  func.func @transform_0(%arg0: i32, %arg1: memref<1xi32, #tpu.memory_space<smem>>) -> (i32, i32) {
    %c0_i32 = arith.constant 0 : i32
    %c0_i32_0 = arith.constant 0 : i32
    return %arg0, %c0_i32 : i32, i32
  }
  func.func @transform_1(%arg0: i32, %arg1: memref<1xi32, #tpu.memory_space<smem>>) -> (i32, i32) {
    %c0_i32 = arith.constant 0 : i32
    %c0_i32_0 = arith.constant 0 : i32
    %c0_i32_1 = arith.constant 0 : i32
    return %c0_i32, %c0_i32_0 : i32, i32
  }
  func.func @transform_2(%arg0: i32, %arg1: memref<1xi32, #tpu.memory_space<smem>>) -> (i32, i32) {
    %c0_i32 = arith.constant 0 : i32
    %c0_i32_0 = arith.constant 0 : i32
    %c0_i32_1 = arith.constant 0 : i32
    return %c0_i32, %c0_i32_0 : i32, i32
  }
  func.func @transform_3(%arg0: i32, %arg1: memref<1xi32, #tpu.memory_space<smem>>) -> (i32, i32) {
    %c0_i32 = arith.constant 0 : i32
    %c0_i32_0 = arith.constant 0 : i32
    %c0_i32_1 = arith.constant 0 : i32
    return %c0_i32, %c0_i32_0 : i32, i32
  }
  func.func @transform_4(%arg0: i32, %arg1: memref<1xi32, #tpu.memory_space<smem>>) -> (i32, i32) {
    %c0_i32 = arith.constant 0 : i32
    %c0_i32_0 = arith.constant 0 : i32
    %c0_i32_1 = arith.constant 0 : i32
    return %c0_i32, %c0_i32_0 : i32, i32
  }
  func.func @transform_5(%arg0: i32, %arg1: memref<1xi32, #tpu.memory_space<smem>>) -> (i32, i32) {
    %c0_i32 = arith.constant 0 : i32
    %c0_i32_0 = arith.constant 0 : i32
    %c0_i32_1 = arith.constant 0 : i32
    return %c0_i32, %c0_i32_0 : i32, i32
  }
  func.func @transform_6(%arg0: i32, %arg1: memref<1xi32, #tpu.memory_space<smem>>) -> (i32, i32) {
    %c0_i32 = arith.constant 0 : i32
    %c0_i32_0 = arith.constant 0 : i32
    %c0_i32_1 = arith.constant 0 : i32
    return %c0_i32, %c0_i32_0 : i32, i32
  }
  func.func @transform_7(%arg0: i32, %arg1: memref<1xi32, #tpu.memory_space<smem>>) -> (i32, i32) {
    %c0_i32 = arith.constant 0 : i32
    %c0_i32_0 = arith.constant 0 : i32
    return %arg0, %c0_i32 : i32, i32
  }
}

module attributes {stable_mosaic.version = 11 : i64} {
  func.func @_mlp_dropout_kernel(%arg0: i32, %arg1: memref<1xi32, #tpu.memory_space<smem>>, %arg2: memref<8x128xbf16, #tpu.memory_space<vmem>>, %arg3: memref<128x128xbf16, #tpu.memory_space<vmem>>, %arg4: memref<1x128xf32, #tpu.memory_space<vmem>>, %arg5: memref<128x128xbf16, #tpu.memory_space<vmem>>, %arg6: memref<1x128xf32, #tpu.memory_space<vmem>>, %arg7: memref<128x128xbf16, #tpu.memory_space<vmem>>, %arg8: memref<1x128xf32, #tpu.memory_space<vmem>>, %arg9: memref<8x128xf32, #tpu.memory_space<vmem>>) attributes {dimension_semantics = [#tpu.dimension_semantics<parallel>], iteration_bounds = array<i64: 1>, scalar_prefetch = 1 : i64, scratch_operands = 0 : i64, tpu.core_type = #tpu.core_type<tc>, window_params = [{transform_indices = @transform_0, window_bounds = array<i64: 8, 128>}, {pipeline_mode = #tpu.pipeline_mode<synchronous>, transform_indices = @transform_1, window_bounds = array<i64: 128, 128>}, {pipeline_mode = #tpu.pipeline_mode<synchronous>, transform_indices = @transform_2, window_bounds = array<i64: 1, 128>}, {pipeline_mode = #tpu.pipeline_mode<synchronous>, transform_indices = @transform_3, window_bounds = array<i64: 128, 128>}, {pipeline_mode = #tpu.pipeline_mode<synchronous>, transform_indices = @transform_4, window_bounds = array<i64: 1, 128>}, {pipeline_mode = #tpu.pipeline_mode<synchronous>, transform_indices = @transform_5, window_bounds = array<i64: 128, 128>}, {pipeline_mode = #tpu.pipeline_mode<synchronous>, transform_indices = @transform_6, window_bounds = array<i64: 1, 128>}, {transform_indices = @transform_7, window_bounds = array<i64: 8, 128>}]} {
    %c0 = arith.constant 0 : index
    %c0_0 = arith.constant 0 : index
    %0 = vector.load %arg2[%c0, %c0_0] : memref<8x128xbf16, #tpu.memory_space<vmem>>, vector<8x128xbf16>
    %c0_1 = arith.constant 0 : index
    %c0_2 = arith.constant 0 : index
    %1 = vector.load %arg3[%c0_1, %c0_2] : memref<128x128xbf16, #tpu.memory_space<vmem>>, vector<128x128xbf16>
    %cst = arith.constant dense<0.000000e+00> : vector<8x128xf32>
    %2 = tpu.matmul %0, %1, %cst {dimension_numbers = #tpu.dot_dimension_numbers<[1], [0], [0], [1], [0, 0, 1, 1], [], []>} : vector<8x128xbf16>, vector<128x128xbf16>, vector<8x128xf32> -> vector<8x128xf32>
    %c0_3 = arith.constant 0 : index
    %c0_4 = arith.constant 0 : index
    %3 = vector.load %arg4[%c0_3, %c0_4] : memref<1x128xf32, #tpu.memory_space<vmem>>, vector<1x128xf32>
    %4 = vector.broadcast %3 : vector<1x128xf32> to vector<8x128xf32>
    %5 = arith.addf %2, %4 : vector<8x128xf32>
    %cst_5 = arith.constant 0.000000e+00 : f32
    %6 = vector.broadcast %cst_5 : f32 to vector<8x128xf32>
    %7 = arith.maximumf %5, %6 : vector<8x128xf32>
    %c0_6 = arith.constant 0 : index
    %8 = memref.load %arg1[%c0_6] : memref<1xi32, #tpu.memory_space<smem>>
    "tpu.prng_set_seed_32"(%8, %arg0) : (i32, i32) -> ()
    %9 = "tpu.prng_random_bits"() : () -> vector<8x128xi32>
    %10 = tpu.bitcast %9 : vector<8x128xi32> -> vector<8x128xi32>
    %c1_i32 = arith.constant 1 : i32
    %11 = vector.broadcast %c1_i32 : i32 to vector<8x128xi32>
    %12 = arith.shrui %10, %11 : vector<8x128xi32>
    %c1073741824_i32 = arith.constant 1073741824 : i32
    %13 = vector.broadcast %c1073741824_i32 : i32 to vector<8x128xi32>
    %14 = arith.cmpi sge, %12, %13 : vector<8x128xi32>
    %cst_7 = arith.constant 0.000000e+00 : f32
    %15 = vector.broadcast %cst_7 : f32 to vector<8x128xf32>
    %16 = arith.select %14, %7, %15 : vector<8x128xi1>, vector<8x128xf32>
    %17 = arith.truncf %16 : vector<8x128xf32> to vector<8x128xbf16>
    %c0_8 = arith.constant 0 : index
    %c0_9 = arith.constant 0 : index
    %18 = vector.load %arg5[%c0_8, %c0_9] : memref<128x128xbf16, #tpu.memory_space<vmem>>, vector<128x128xbf16>
    %cst_10 = arith.constant dense<0.000000e+00> : vector<8x128xf32>
    %19 = tpu.matmul %17, %18, %cst_10 {dimension_numbers = #tpu.dot_dimension_numbers<[1], [0], [0], [1], [0, 0, 1, 1], [], []>} : vector<8x128xbf16>, vector<128x128xbf16>, vector<8x128xf32> -> vector<8x128xf32>
    %c0_11 = arith.constant 0 : index
    %c0_12 = arith.constant 0 : index
    %20 = vector.load %arg6[%c0_11, %c0_12] : memref<1x128xf32, #tpu.memory_space<vmem>>, vector<1x128xf32>
    %21 = vector.broadcast %20 : vector<1x128xf32> to vector<8x128xf32>
    %22 = arith.addf %19, %21 : vector<8x128xf32>
    %cst_13 = arith.constant 0.000000e+00 : f32
    %23 = vector.broadcast %cst_13 : f32 to vector<8x128xf32>
    %24 = arith.maximumf %22, %23 : vector<8x128xf32>
    %25 = "tpu.prng_random_bits"() : () -> vector<8x128xi32>
    %26 = tpu.bitcast %25 : vector<8x128xi32> -> vector<8x128xi32>
    %c1_i32_14 = arith.constant 1 : i32
    %27 = vector.broadcast %c1_i32_14 : i32 to vector<8x128xi32>
    %28 = arith.shrui %26, %27 : vector<8x128xi32>
    %c1073741824_i32_15 = arith.constant 1073741824 : i32
    %29 = vector.broadcast %c1073741824_i32_15 : i32 to vector<8x128xi32>
    %30 = arith.cmpi sge, %28, %29 : vector<8x128xi32>
    %cst_16 = arith.constant 0.000000e+00 : f32
    %31 = vector.broadcast %cst_16 : f32 to vector<8x128xf32>
    %32 = arith.select %30, %24, %31 : vector<8x128xi1>, vector<8x128xf32>
    %33 = arith.truncf %32 : vector<8x128xf32> to vector<8x128xbf16>
    %c0_17 = arith.constant 0 : index
    %c0_18 = arith.constant 0 : index
    %34 = vector.load %arg7[%c0_17, %c0_18] : memref<128x128xbf16, #tpu.memory_space<vmem>>, vector<128x128xbf16>
    %cst_19 = arith.constant dense<0.000000e+00> : vector<8x128xf32>
    %35 = tpu.matmul %33, %34, %cst_19 {dimension_numbers = #tpu.dot_dimension_numbers<[1], [0], [0], [1], [0, 0, 1, 1], [], []>} : vector<8x128xbf16>, vector<128x128xbf16>, vector<8x128xf32> -> vector<8x128xf32>
    %c0_20 = arith.constant 0 : index
    %c0_21 = arith.constant 0 : index
    %36 = vector.load %arg8[%c0_20, %c0_21] : memref<1x128xf32, #tpu.memory_space<vmem>>, vector<1x128xf32>
    %37 = vector.broadcast %36 : vector<1x128xf32> to vector<8x128xf32>
    %38 = arith.addf %35, %37 : vector<8x128xf32>
    %c0_22 = arith.constant 0 : index
    %c0_23 = arith.constant 0 : index
    %39 = vector.load %arg9[%c0_22, %c0_23] : memref<8x128xf32, #tpu.memory_space<vmem>>, vector<8x128xf32>
    tpu.vector_store %arg9[%c0_22, %c0_23], %38 {strides = array<i32>} : memref<8x128xf32, #tpu.memory_space<vmem>>, vector<8x128xf32>,
    return
  }
  func.func @transform_0(%arg0: i32, %arg1: memref<1xi32, #tpu.memory_space<smem>>) -> (i32, i32) {
    %c0_i32 = arith.constant 0 : i32
    %c0_i32_0 = arith.constant 0 : i32
    return %arg0, %c0_i32 : i32, i32
  }
  func.func @transform_1(%arg0: i32, %arg1: memref<1xi32, #tpu.memory_space<smem>>) -> (i32, i32) {
    %c0_i32 = arith.constant 0 : i32
    %c0_i32_0 = arith.constant 0 : i32
    %c0_i32_1 = arith.constant 0 : i32
    return %c0_i32, %c0_i32_0 : i32, i32
  }
  func.func @transform_2(%arg0: i32, %arg1: memref<1xi32, #tpu.memory_space<smem>>) -> (i32, i32) {
    %c0_i32 = arith.constant 0 : i32
    %c0_i32_0 = arith.constant 0 : i32
    %c0_i32_1 = arith.constant 0 : i32
    return %c0_i32, %c0_i32_0 : i32, i32
  }
  func.func @transform_3(%arg0: i32, %arg1: memref<1xi32, #tpu.memory_space<smem>>) -> (i32, i32) {
    %c0_i32 = arith.constant 0 : i32
    %c0_i32_0 = arith.constant 0 : i32
    %c0_i32_1 = arith.constant 0 : i32
    return %c0_i32, %c0_i32_0 : i32, i32
  }
  func.func @transform_4(%arg0: i32, %arg1: memref<1xi32, #tpu.memory_space<smem>>) -> (i32, i32) {
    %c0_i32 = arith.constant 0 : i32
    %c0_i32_0 = arith.constant 0 : i32
    %c0_i32_1 = arith.constant 0 : i32
    return %c0_i32, %c0_i32_0 : i32, i32
  }
  func.func @transform_5(%arg0: i32, %arg1: memref<1xi32, #tpu.memory_space<smem>>) -> (i32, i32) {
    %c0_i32 = arith.constant 0 : i32
    %c0_i32_0 = arith.constant 0 : i32
    %c0_i32_1 = arith.constant 0 : i32
    return %c0_i32, %c0_i32_0 : i32, i32
  }
  func.func @transform_6(%arg0: i32, %arg1: memref<1xi32, #tpu.memory_space<smem>>) -> (i32, i32) {
    %c0_i32 = arith.constant 0 : i32
    %c0_i32_0 = arith.constant 0 : i32
    %c0_i32_1 = arith.constant 0 : i32
    return %c0_i32, %c0_i32_0 : i32, i32
  }
  func.func @transform_7(%arg0: i32, %arg1: memref<1xi32, #tpu.memory_space<smem>>) -> (i32, i32) {
    %c0_i32 = arith.constant 0 : i32
    %c0_i32_0 = arith.constant 0 : i32
    return %arg0, %c0_i32 : i32, i32
  }
}

module attributes {stable_mosaic.version = 11 : i64} {
  func.func @_mlp_dropout_kernel(%arg0: i32, %arg1: memref<1xi32, #tpu.memory_space<smem>>, %arg2: memref<8x128xbf16, #tpu.memory_space<vmem>>, %arg3: memref<128x128xbf16, #tpu.memory_space<vmem>>, %arg4: memref<1x128xf32, #tpu.memory_space<vmem>>, %arg5: memref<128x128xbf16, #tpu.memory_space<vmem>>, %arg6: memref<1x128xf32, #tpu.memory_space<vmem>>, %arg7: memref<128x128xbf16, #tpu.memory_space<vmem>>, %arg8: memref<1x128xf32, #tpu.memory_space<vmem>>, %arg9: memref<8x128xf32, #tpu.memory_space<vmem>>) attributes {dimension_semantics = [#tpu.dimension_semantics<parallel>], iteration_bounds = array<i64: 1>, scalar_prefetch = 1 : i64, scratch_operands = 0 : i64, tpu.core_type = #tpu.core_type<tc>, window_params = [{transform_indices = @transform_0, window_bounds = array<i64: 8, 128>}, {pipeline_mode = #tpu.pipeline_mode<synchronous>, transform_indices = @transform_1, window_bounds = array<i64: 128, 128>}, {pipeline_mode = #tpu.pipeline_mode<synchronous>, transform_indices = @transform_2, window_bounds = array<i64: 1, 128>}, {pipeline_mode = #tpu.pipeline_mode<synchronous>, transform_indices = @transform_3, window_bounds = array<i64: 128, 128>}, {pipeline_mode = #tpu.pipeline_mode<synchronous>, transform_indices = @transform_4, window_bounds = array<i64: 1, 128>}, {pipeline_mode = #tpu.pipeline_mode<synchronous>, transform_indices = @transform_5, window_bounds = array<i64: 128, 128>}, {pipeline_mode = #tpu.pipeline_mode<synchronous>, transform_indices = @transform_6, window_bounds = array<i64: 1, 128>}, {transform_indices = @transform_7, window_bounds = array<i64: 8, 128>}]} {
    %c0 = arith.constant 0 : index
    %c0_0 = arith.constant 0 : index
    %0 = vector.load %arg2[%c0, %c0_0] : memref<8x128xbf16, #tpu.memory_space<vmem>>, vector<8x128xbf16>
    %c0_1 = arith.constant 0 : index
    %c0_2 = arith.constant 0 : index
    %1 = vector.load %arg3[%c0_1, %c0_2] : memref<128x128xbf16, #tpu.memory_space<vmem>>, vector<128x128xbf16>
    %cst = arith.constant dense<0.000000e+00> : vector<8x128xf32>
    %2 = tpu.matmul %0, %1, %cst {dimension_numbers = #tpu.dot_dimension_numbers<[1], [0], [0], [1], [0, 0, 1, 1], [], []>} : vector<8x128xbf16>, vector<128x128xbf16>, vector<8x128xf32> -> vector<8x128xf32>
    %c0_3 = arith.constant 0 : index
    %c0_4 = arith.constant 0 : index
    %3 = vector.load %arg4[%c0_3, %c0_4] : memref<1x128xf32, #tpu.memory_space<vmem>>, vector<1x128xf32>
    %4 = vector.broadcast %3 : vector<1x128xf32> to vector<8x128xf32>
    %5 = arith.addf %2, %4 : vector<8x128xf32>
    %cst_5 = arith.constant 0.000000e+00 : f32
    %6 = vector.broadcast %cst_5 : f32 to vector<8x128xf32>
    %7 = arith.maximumf %5, %6 : vector<8x128xf32>
    %c8_i32 = arith.constant 8 : i32
    %8 = arith.muli %arg0, %c8_i32 : i32
    %c0_6 = arith.constant 0 : index
    %9 = memref.load %arg1[%c0_6] : memref<1xi32, #tpu.memory_space<smem>>
    %10 = tpu.iota {dimensions = array<i32: 0>} : vector<8x128xi32>
    %11 = vector.broadcast %8 : i32 to vector<8x128xi32>
    %12 = arith.addi %10, %11 : vector<8x128xi32>
    %13 = tpu.iota {dimensions = array<i32: 1>} : vector<8x128xi32>
    %c128_i32 = arith.constant 128 : i32
    %14 = vector.broadcast %c128_i32 : i32 to vector<8x128xi32>
    %15 = arith.muli %12, %14 : vector<8x128xi32>
    %16 = arith.addi %15, %13 : vector<8x128xi32>
    %c-1640531535_i32 = arith.constant -1640531535 : i32
    %17 = vector.broadcast %c-1640531535_i32 : i32 to vector<8x128xi32>
    %18 = arith.muli %16, %17 : vector<8x128xi32>
    %c-2048144789_i32 = arith.constant -2048144789 : i32
    %19 = arith.muli %9, %c-2048144789_i32 : i32
    %20 = vector.broadcast %19 : i32 to vector<8x128xi32>
    %21 = arith.xori %18, %20 : vector<8x128xi32>
    %c461845907_i32 = arith.constant 461845907 : i32
    %22 = vector.broadcast %c461845907_i32 : i32 to vector<8x128xi32>
    %23 = arith.xori %21, %22 : vector<8x128xi32>
    %c16_i32 = arith.constant 16 : i32
    %24 = vector.broadcast %c16_i32 : i32 to vector<8x128xi32>
    %25 = arith.shrui %23, %24 : vector<8x128xi32>
    %26 = arith.xori %23, %25 : vector<8x128xi32>
    %c2146121005_i32 = arith.constant 2146121005 : i32
    %27 = vector.broadcast %c2146121005_i32 : i32 to vector<8x128xi32>
    %28 = arith.muli %26, %27 : vector<8x128xi32>
    %c15_i32 = arith.constant 15 : i32
    %29 = vector.broadcast %c15_i32 : i32 to vector<8x128xi32>
    %30 = arith.shrui %28, %29 : vector<8x128xi32>
    %31 = arith.xori %28, %30 : vector<8x128xi32>
    %c-2073254261_i32 = arith.constant -2073254261 : i32
    %32 = vector.broadcast %c-2073254261_i32 : i32 to vector<8x128xi32>
    %33 = arith.muli %31, %32 : vector<8x128xi32>
    %c16_i32_7 = arith.constant 16 : i32
    %34 = vector.broadcast %c16_i32_7 : i32 to vector<8x128xi32>
    %35 = arith.shrui %33, %34 : vector<8x128xi32>
    %36 = arith.xori %33, %35 : vector<8x128xi32>
    %c1_i32 = arith.constant 1 : i32
    %37 = vector.broadcast %c1_i32 : i32 to vector<8x128xi32>
    %38 = arith.shrui %36, %37 : vector<8x128xi32>
    %c1073741824_i32 = arith.constant 1073741824 : i32
    %39 = vector.broadcast %c1073741824_i32 : i32 to vector<8x128xi32>
    %40 = arith.cmpi sge, %38, %39 : vector<8x128xi32>
    %cst_8 = arith.constant 0.000000e+00 : f32
    %41 = vector.broadcast %cst_8 : f32 to vector<8x128xf32>
    %42 = arith.select %40, %7, %41 : vector<8x128xi1>, vector<8x128xf32>
    %43 = arith.truncf %42 : vector<8x128xf32> to vector<8x128xbf16>
    %c0_9 = arith.constant 0 : index
    %c0_10 = arith.constant 0 : index
    %44 = vector.load %arg5[%c0_9, %c0_10] : memref<128x128xbf16, #tpu.memory_space<vmem>>, vector<128x128xbf16>
    %cst_11 = arith.constant dense<0.000000e+00> : vector<8x128xf32>
    %45 = tpu.matmul %43, %44, %cst_11 {dimension_numbers = #tpu.dot_dimension_numbers<[1], [0], [0], [1], [0, 0, 1, 1], [], []>} : vector<8x128xbf16>, vector<128x128xbf16>, vector<8x128xf32> -> vector<8x128xf32>
    %c0_12 = arith.constant 0 : index
    %c0_13 = arith.constant 0 : index
    %46 = vector.load %arg6[%c0_12, %c0_13] : memref<1x128xf32, #tpu.memory_space<vmem>>, vector<1x128xf32>
    %47 = vector.broadcast %46 : vector<1x128xf32> to vector<8x128xf32>
    %48 = arith.addf %45, %47 : vector<8x128xf32>
    %cst_14 = arith.constant 0.000000e+00 : f32
    %49 = vector.broadcast %cst_14 : f32 to vector<8x128xf32>
    %50 = arith.maximumf %48, %49 : vector<8x128xf32>
    %c1390208809_i32 = arith.constant 1390208809 : i32
    %51 = vector.broadcast %c1390208809_i32 : i32 to vector<8x128xi32>
    %52 = arith.xori %21, %51 : vector<8x128xi32>
    %c16_i32_15 = arith.constant 16 : i32
    %53 = vector.broadcast %c16_i32_15 : i32 to vector<8x128xi32>
    %54 = arith.shrui %52, %53 : vector<8x128xi32>
    %55 = arith.xori %52, %54 : vector<8x128xi32>
    %c2146121005_i32_16 = arith.constant 2146121005 : i32
    %56 = vector.broadcast %c2146121005_i32_16 : i32 to vector<8x128xi32>
    %57 = arith.muli %55, %56 : vector<8x128xi32>
    %c15_i32_17 = arith.constant 15 : i32
    %58 = vector.broadcast %c15_i32_17 : i32 to vector<8x128xi32>
    %59 = arith.shrui %57, %58 : vector<8x128xi32>
    %60 = arith.xori %57, %59 : vector<8x128xi32>
    %c-2073254261_i32_18 = arith.constant -2073254261 : i32
    %61 = vector.broadcast %c-2073254261_i32_18 : i32 to vector<8x128xi32>
    %62 = arith.muli %60, %61 : vector<8x128xi32>
    %c16_i32_19 = arith.constant 16 : i32
    %63 = vector.broadcast %c16_i32_19 : i32 to vector<8x128xi32>
    %64 = arith.shrui %62, %63 : vector<8x128xi32>
    %65 = arith.xori %62, %64 : vector<8x128xi32>
    %c1_i32_20 = arith.constant 1 : i32
    %66 = vector.broadcast %c1_i32_20 : i32 to vector<8x128xi32>
    %67 = arith.shrui %65, %66 : vector<8x128xi32>
    %c1073741824_i32_21 = arith.constant 1073741824 : i32
    %68 = vector.broadcast %c1073741824_i32_21 : i32 to vector<8x128xi32>
    %69 = arith.cmpi sge, %67, %68 : vector<8x128xi32>
    %cst_22 = arith.constant 0.000000e+00 : f32
    %70 = vector.broadcast %cst_22 : f32 to vector<8x128xf32>
    %71 = arith.select %69, %50, %70 : vector<8x128xi1>, vector<8x128xf32>
    %72 = arith.truncf %71 : vector<8x128xf32> to vector<8x128xbf16>
    %c0_23 = arith.constant 0 : index
    %c0_24 = arith.constant 0 : index
    %73 = vector.load %arg7[%c0_23, %c0_24] : memref<128x128xbf16, #tpu.memory_space<vmem>>, vector<128x128xbf16>
    %cst_25 = arith.constant dense<0.000000e+00> : vector<8x128xf32>
    %74 = tpu.matmul %72, %73, %cst_25 {dimension_numbers = #tpu.dot_dimension_numbers<[1], [0], [0], [1], [0, 0, 1, 1], [], []>} : vector<8x128xbf16>, vector<128x128xbf16>, vector<8x128xf32> -> vector<8x128xf32>
    %c0_26 = arith.constant 0 : index
    %c0_27 = arith.constant 0 : index
    %75 = vector.load %arg8[%c0_26, %c0_27] : memref<1x128xf32, #tpu.memory_space<vmem>>, vector<1x128xf32>
    %76 = vector.broadcast %75 : vector<1x128xf32> to vector<8x128xf32>
    %77 = arith.addf %74, %76 : vector<8x128xf32>
    %c0_28 = arith.constant 0 : index
    %c0_29 = arith.constant 0 : index
    %78 = vector.load %arg9[%c0_28, %c0_29] : memref<8x128xf32, #tpu.memory_space<vmem>>, vector<8x128xf32>
    tpu.vector_store %arg9[%c0_28, %c0_29], %77 {strides = array<i32>} : memref<8x128xf32, #tpu.memory_space<vmem>>, vector<8x128xf32>,
    return
  }
  func.func @transform_0(%arg0: i32, %arg1: memref<1xi32, #tpu.memory_space<smem>>) -> (i32, i32) {
    %c0_i32 = arith.constant 0 : i32
    %c0_i32_0 = arith.constant 0 : i32
    return %arg0, %c0_i32 : i32, i32
  }
  func.func @transform_1(%arg0: i32, %arg1: memref<1xi32, #tpu.memory_space<smem>>) -> (i32, i32) {
    %c0_i32 = arith.constant 0 : i32
    %c0_i32_0 = arith.constant 0 : i32
    %c0_i32_1 = arith.constant 0 : i32
    return %c0_i32, %c0_i32_0 : i32, i32
  }
  func.func @transform_2(%arg0: i32, %arg1: memref<1xi32, #tpu.memory_space<smem>>) -> (i32, i32) {
    %c0_i32 = arith.constant 0 : i32
    %c0_i32_0 = arith.constant 0 : i32
    %c0_i32_1 = arith.constant 0 : i32
    return %c0_i32, %c0_i32_0 : i32, i32
  }
  func.func @transform_3(%arg0: i32, %arg1: memref<1xi32, #tpu.memory_space<smem>>) -> (i32, i32) {
    %c0_i32 = arith.constant 0 : i32
    %c0_i32_0 = arith.constant 0 : i32
    %c0_i32_1 = arith.constant 0 : i32
    return %c0_i32, %c0_i32_0 : i32, i32
  }
  func.func @transform_4(%arg0: i32, %arg1: memref<1xi32, #tpu.memory_space<smem>>) -> (i32, i32) {
    %c0_i32 = arith.constant 0 : i32
    %c0_i32_0 = arith.constant 0 : i32
    %c0_i32_1 = arith.constant 0 : i32
    return %c0_i32, %c0_i32_0 : i32, i32
  }
  func.func @transform_5(%arg0: i32, %arg1: memref<1xi32, #tpu.memory_space<smem>>) -> (i32, i32) {
    %c0_i32 = arith.constant 0 : i32
    %c0_i32_0 = arith.constant 0 : i32
    %c0_i32_1 = arith.constant 0 : i32
    return %c0_i32, %c0_i32_0 : i32, i32
  }
  func.func @transform_6(%arg0: i32, %arg1: memref<1xi32, #tpu.memory_space<smem>>) -> (i32, i32) {
    %c0_i32 = arith.constant 0 : i32
    %c0_i32_0 = arith.constant 0 : i32
    %c0_i32_1 = arith.constant 0 : i32
    return %c0_i32, %c0_i32_0 : i32, i32
  }
  func.func @transform_7(%arg0: i32, %arg1: memref<1xi32, #tpu.memory_space<smem>>) -> (i32, i32) {
    %c0_i32 = arith.constant 0 : i32
    %c0_i32_0 = arith.constant 0 : i32
    return %arg0, %c0_i32 : i32, i32
  }
}

module attributes {stable_mosaic.version = 11 : i64} {
  func.func @_mlp_dropout_kernel(%arg0: i32, %arg1: memref<1xi32, #tpu.memory_space<smem>>, %arg2: memref<8x128xbf16, #tpu.memory_space<vmem>>, %arg3: memref<128x128xbf16, #tpu.memory_space<vmem>>, %arg4: memref<1x128xf32, #tpu.memory_space<vmem>>, %arg5: memref<128x128xbf16, #tpu.memory_space<vmem>>, %arg6: memref<1x128xf32, #tpu.memory_space<vmem>>, %arg7: memref<128x128xbf16, #tpu.memory_space<vmem>>, %arg8: memref<1x128xf32, #tpu.memory_space<vmem>>, %arg9: memref<8x128xf32, #tpu.memory_space<vmem>>) attributes {dimension_semantics = [#tpu.dimension_semantics<parallel>], iteration_bounds = array<i64: 1>, scalar_prefetch = 1 : i64, scratch_operands = 0 : i64, tpu.core_type = #tpu.core_type<tc>, window_params = [{transform_indices = @transform_0, window_bounds = array<i64: 8, 128>}, {pipeline_mode = #tpu.pipeline_mode<synchronous>, transform_indices = @transform_1, window_bounds = array<i64: 128, 128>}, {pipeline_mode = #tpu.pipeline_mode<synchronous>, transform_indices = @transform_2, window_bounds = array<i64: 1, 128>}, {pipeline_mode = #tpu.pipeline_mode<synchronous>, transform_indices = @transform_3, window_bounds = array<i64: 128, 128>}, {pipeline_mode = #tpu.pipeline_mode<synchronous>, transform_indices = @transform_4, window_bounds = array<i64: 1, 128>}, {pipeline_mode = #tpu.pipeline_mode<synchronous>, transform_indices = @transform_5, window_bounds = array<i64: 128, 128>}, {pipeline_mode = #tpu.pipeline_mode<synchronous>, transform_indices = @transform_6, window_bounds = array<i64: 1, 128>}, {transform_indices = @transform_7, window_bounds = array<i64: 8, 128>}]} {
    %c0 = arith.constant 0 : index
    %c0_0 = arith.constant 0 : index
    %0 = vector.load %arg2[%c0, %c0_0] : memref<8x128xbf16, #tpu.memory_space<vmem>>, vector<8x128xbf16>
    %c0_1 = arith.constant 0 : index
    %c0_2 = arith.constant 0 : index
    %1 = vector.load %arg3[%c0_1, %c0_2] : memref<128x128xbf16, #tpu.memory_space<vmem>>, vector<128x128xbf16>
    %cst = arith.constant dense<0.000000e+00> : vector<8x128xf32>
    %2 = tpu.matmul %0, %1, %cst {dimension_numbers = #tpu.dot_dimension_numbers<[1], [0], [0], [1], [0, 0, 1, 1], [], []>} : vector<8x128xbf16>, vector<128x128xbf16>, vector<8x128xf32> -> vector<8x128xf32>
    %c0_3 = arith.constant 0 : index
    %c0_4 = arith.constant 0 : index
    %3 = vector.load %arg4[%c0_3, %c0_4] : memref<1x128xf32, #tpu.memory_space<vmem>>, vector<1x128xf32>
    %4 = vector.broadcast %3 : vector<1x128xf32> to vector<8x128xf32>
    %5 = arith.addf %2, %4 : vector<8x128xf32>
    %cst_5 = arith.constant 0.000000e+00 : f32
    %6 = vector.broadcast %cst_5 : f32 to vector<8x128xf32>
    %7 = arith.maximumf %5, %6 : vector<8x128xf32>
    %c8_i32 = arith.constant 8 : i32
    %8 = arith.muli %arg0, %c8_i32 : i32
    %c0_6 = arith.constant 0 : index
    %9 = memref.load %arg1[%c0_6] : memref<1xi32, #tpu.memory_space<smem>>
    %10 = tpu.iota {dimensions = array<i32: 0>} : vector<8x128xi32>
    %11 = vector.broadcast %8 : i32 to vector<8x128xi32>
    %12 = arith.addi %10, %11 : vector<8x128xi32>
    %13 = tpu.iota {dimensions = array<i32: 1>} : vector<8x128xi32>
    %c128_i32 = arith.constant 128 : i32
    %14 = vector.broadcast %c128_i32 : i32 to vector<8x128xi32>
    %15 = arith.muli %12, %14 : vector<8x128xi32>
    %16 = arith.addi %15, %13 : vector<8x128xi32>
    %c-1640531535_i32 = arith.constant -1640531535 : i32
    %17 = vector.broadcast %c-1640531535_i32 : i32 to vector<8x128xi32>
    %18 = arith.muli %16, %17 : vector<8x128xi32>
    %c-2048144789_i32 = arith.constant -2048144789 : i32
    %19 = arith.muli %9, %c-2048144789_i32 : i32
    %20 = vector.broadcast %19 : i32 to vector<8x128xi32>
    %21 = arith.xori %18, %20 : vector<8x128xi32>
    %c461845907_i32 = arith.constant 461845907 : i32
    %22 = vector.broadcast %c461845907_i32 : i32 to vector<8x128xi32>
    %23 = arith.xori %21, %22 : vector<8x128xi32>
    %c16_i32 = arith.constant 16 : i32
    %24 = vector.broadcast %c16_i32 : i32 to vector<8x128xi32>
    %25 = arith.shrui %23, %24 : vector<8x128xi32>
    %26 = arith.xori %23, %25 : vector<8x128xi32>
    %c2146121005_i32 = arith.constant 2146121005 : i32
    %27 = vector.broadcast %c2146121005_i32 : i32 to vector<8x128xi32>
    %28 = arith.muli %26, %27 : vector<8x128xi32>
    %c15_i32 = arith.constant 15 : i32
    %29 = vector.broadcast %c15_i32 : i32 to vector<8x128xi32>
    %30 = arith.shrui %28, %29 : vector<8x128xi32>
    %31 = arith.xori %28, %30 : vector<8x128xi32>
    %c-2073254261_i32 = arith.constant -2073254261 : i32
    %32 = vector.broadcast %c-2073254261_i32 : i32 to vector<8x128xi32>
    %33 = arith.muli %31, %32 : vector<8x128xi32>
    %c16_i32_7 = arith.constant 16 : i32
    %34 = vector.broadcast %c16_i32_7 : i32 to vector<8x128xi32>
    %35 = arith.shrui %33, %34 : vector<8x128xi32>
    %36 = arith.xori %33, %35 : vector<8x128xi32>
    %c1_i32 = arith.constant 1 : i32
    %37 = vector.broadcast %c1_i32 : i32 to vector<8x128xi32>
    %38 = arith.shrui %36, %37 : vector<8x128xi32>
    %c1073741824_i32 = arith.constant 1073741824 : i32
    %39 = vector.broadcast %c1073741824_i32 : i32 to vector<8x128xi32>
    %40 = arith.cmpi sge, %38, %39 : vector<8x128xi32>
    %cst_8 = arith.constant 0.000000e+00 : f32
    %41 = vector.broadcast %cst_8 : f32 to vector<8x128xf32>
    %42 = arith.select %40, %7, %41 : vector<8x128xi1>, vector<8x128xf32>
    %43 = arith.truncf %42 : vector<8x128xf32> to vector<8x128xbf16>
    %c0_9 = arith.constant 0 : index
    %c0_10 = arith.constant 0 : index
    %44 = vector.load %arg5[%c0_9, %c0_10] : memref<128x128xbf16, #tpu.memory_space<vmem>>, vector<128x128xbf16>
    %cst_11 = arith.constant dense<0.000000e+00> : vector<8x128xf32>
    %45 = tpu.matmul %43, %44, %cst_11 {dimension_numbers = #tpu.dot_dimension_numbers<[1], [0], [0], [1], [0, 0, 1, 1], [], []>} : vector<8x128xbf16>, vector<128x128xbf16>, vector<8x128xf32> -> vector<8x128xf32>
    %c0_12 = arith.constant 0 : index
    %c0_13 = arith.constant 0 : index
    %46 = vector.load %arg6[%c0_12, %c0_13] : memref<1x128xf32, #tpu.memory_space<vmem>>, vector<1x128xf32>
    %47 = vector.broadcast %46 : vector<1x128xf32> to vector<8x128xf32>
    %48 = arith.addf %45, %47 : vector<8x128xf32>
    %cst_14 = arith.constant 0.000000e+00 : f32
    %49 = vector.broadcast %cst_14 : f32 to vector<8x128xf32>
    %50 = arith.maximumf %48, %49 : vector<8x128xf32>
    %c1390208809_i32 = arith.constant 1390208809 : i32
    %51 = vector.broadcast %c1390208809_i32 : i32 to vector<8x128xi32>
    %52 = arith.xori %21, %51 : vector<8x128xi32>
    %c16_i32_15 = arith.constant 16 : i32
    %53 = vector.broadcast %c16_i32_15 : i32 to vector<8x128xi32>
    %54 = arith.shrui %52, %53 : vector<8x128xi32>
    %55 = arith.xori %52, %54 : vector<8x128xi32>
    %c2146121005_i32_16 = arith.constant 2146121005 : i32
    %56 = vector.broadcast %c2146121005_i32_16 : i32 to vector<8x128xi32>
    %57 = arith.muli %55, %56 : vector<8x128xi32>
    %c15_i32_17 = arith.constant 15 : i32
    %58 = vector.broadcast %c15_i32_17 : i32 to vector<8x128xi32>
    %59 = arith.shrui %57, %58 : vector<8x128xi32>
    %60 = arith.xori %57, %59 : vector<8x128xi32>
    %c-2073254261_i32_18 = arith.constant -2073254261 : i32
    %61 = vector.broadcast %c-2073254261_i32_18 : i32 to vector<8x128xi32>
    %62 = arith.muli %60, %61 : vector<8x128xi32>
    %c16_i32_19 = arith.constant 16 : i32
    %63 = vector.broadcast %c16_i32_19 : i32 to vector<8x128xi32>
    %64 = arith.shrui %62, %63 : vector<8x128xi32>
    %65 = arith.xori %62, %64 : vector<8x128xi32>
    %c1_i32_20 = arith.constant 1 : i32
    %66 = vector.broadcast %c1_i32_20 : i32 to vector<8x128xi32>
    %67 = arith.shrui %65, %66 : vector<8x128xi32>
    %c1073741824_i32_21 = arith.constant 1073741824 : i32
    %68 = vector.broadcast %c1073741824_i32_21 : i32 to vector<8x128xi32>
    %69 = arith.cmpi sge, %67, %68 : vector<8x128xi32>
    %cst_22 = arith.constant 0.000000e+00 : f32
    %70 = vector.broadcast %cst_22 : f32 to vector<8x128xf32>
    %71 = arith.select %69, %50, %70 : vector<8x128xi1>, vector<8x128xf32>
    %72 = arith.truncf %71 : vector<8x128xf32> to vector<8x128xbf16>
    %c0_23 = arith.constant 0 : index
    %c0_24 = arith.constant 0 : index
    %73 = vector.load %arg7[%c0_23, %c0_24] : memref<128x128xbf16, #tpu.memory_space<vmem>>, vector<128x128xbf16>
    %cst_25 = arith.constant dense<0.000000e+00> : vector<8x128xf32>
    %74 = tpu.matmul %72, %73, %cst_25 {dimension_numbers = #tpu.dot_dimension_numbers<[1], [0], [0], [1], [0, 0, 1, 1], [], []>} : vector<8x128xbf16>, vector<128x128xbf16>, vector<8x128xf32> -> vector<8x128xf32>
    %c0_26 = arith.constant 0 : index
    %c0_27 = arith.constant 0 : index
    %75 = vector.load %arg8[%c0_26, %c0_27] : memref<1x128xf32, #tpu.memory_space<vmem>>, vector<1x128xf32>
    %76 = vector.broadcast %75 : vector<1x128xf32> to vector<8x128xf32>
    %77 = arith.addf %74, %76 : vector<8x128xf32>
    %c0_28 = arith.constant 0 : index
    %c0_29 = arith.constant 0 : index
    %78 = vector.load %arg9[%c0_28, %c0_29] : memref<8x128xf32, #tpu.memory_space<vmem>>, vector<8x128xf32>
    tpu.vector_store %arg9[%c0_28, %c0_29], %77 {strides = array<i32>} : memref<8x128xf32, #tpu.memory_space<vmem>>, vector<8x128xf32>,
    return
  }
  func.func @transform_0(%arg0: i32, %arg1: memref<1xi32, #tpu.memory_space<smem>>) -> (i32, i32) {
    %c0_i32 = arith.constant 0 : i32
    %c0_i32_0 = arith.constant 0 : i32
    return %arg0, %c0_i32 : i32, i32
  }
  func.func @transform_1(%arg0: i32, %arg1: memref<1xi32, #tpu.memory_space<smem>>) -> (i32, i32) {
    %c0_i32 = arith.constant 0 : i32
    %c0_i32_0 = arith.constant 0 : i32
    %c0_i32_1 = arith.constant 0 : i32
    return %c0_i32, %c0_i32_0 : i32, i32
  }
  func.func @transform_2(%arg0: i32, %arg1: memref<1xi32, #tpu.memory_space<smem>>) -> (i32, i32) {
    %c0_i32 = arith.constant 0 : i32
    %c0_i32_0 = arith.constant 0 : i32
    %c0_i32_1 = arith.constant 0 : i32
    return %c0_i32, %c0_i32_0 : i32, i32
  }
  func.func @transform_3(%arg0: i32, %arg1: memref<1xi32, #tpu.memory_space<smem>>) -> (i32, i32) {
    %c0_i32 = arith.constant 0 : i32
    %c0_i32_0 = arith.constant 0 : i32
    %c0_i32_1 = arith.constant 0 : i32
    return %c0_i32, %c0_i32_0 : i32, i32
  }
  func.func @transform_4(%arg0: i32, %arg1: memref<1xi32, #tpu.memory_space<smem>>) -> (i32, i32) {
    %c0_i32 = arith.constant 0 : i32
    %c0_i32_0 = arith.constant 0 : i32
    %c0_i32_1 = arith.constant 0 : i32
    return %c0_i32, %c0_i32_0 : i32, i32
  }
  func.func @transform_5(%arg0: i32, %arg1: memref<1xi32, #tpu.memory_space<smem>>) -> (i32, i32) {
    %c0_i32 = arith.constant 0 : i32
    %c0_i32_0 = arith.constant 0 : i32
    %c0_i32_1 = arith.constant 0 : i32
    return %c0_i32, %c0_i32_0 : i32, i32
  }
  func.func @transform_6(%arg0: i32, %arg1: memref<1xi32, #tpu.memory_space<smem>>) -> (i32, i32) {
    %c0_i32 = arith.constant 0 : i32
    %c0_i32_0 = arith.constant 0 : i32
    %c0_i32_1 = arith.constant 0 : i32
    return %c0_i32, %c0_i32_0 : i32, i32
  }
  func.func @transform_7(%arg0: i32, %arg1: memref<1xi32, #tpu.memory_space<smem>>) -> (i32, i32) {
    %c0_i32 = arith.constant 0 : i32
    %c0_i32_0 = arith.constant 0 : i32
    return %arg0, %c0_i32 : i32, i32
  }
}

</mosaic_0001>

<bundles_post_ra>
// kernel: tpu_custom_call.1
= control target key start
LH: loop header
LB: loop body
LE: loop exit
PB: predicated region body
PF: predicated region fallthrough
CT: control target
= control target key end

     0   :  { %14 = vsyncpa [#allocation5], 0  ;;  %s1021_s0 = inlined_call_operand.<no memory space> [shape: s32[1], index: 0, kind: input, shape index: {}]   ;;  %s1022_s1 = inlined_call_operand.hbm [shape: bf16[8,128], index: 1, kind: input, shape index: {}]   ;;  %s1023_s2 = inlined_call_operand.hbm [shape: bf16[128,128], index: 2, kind: input, shape index: {}]   ;;  %s1024_s3 = inlined_call_operand.vmem [shape: f32[1,128], index: 3, kind: input, shape index: {}]   ;;  %s1025_s4 = inlined_call_operand.hbm [shape: bf16[128,128], index: 4, kind: input, shape index: {}]   ;;  %s1026_s5 = inlined_call_operand.vmem [shape: f32[1,128], index: 5, kind: input, shape index: {}]   ;;  %s1027_s6 = inlined_call_operand.hbm [shape: bf16[128,128], index: 6, kind: input, shape index: {}]   ;;  %s1028_s7 = inlined_call_operand.vmem [shape: f32[1,128], index: 7, kind: input, shape index: {}]   ;;  %s1029_s8 = inlined_call_operand.hbm [shape: f32[8,128], index: 8, kind: output, shape index: {}]  }
   0x1   :  { %15 = vsyncpa [#allocation8], 0 }
   0x2   :  { %16 = vsyncpa [#allocation11], 0 }
   0x3   :  { %17 = vsyncpa [#allocation6], 0  ;;  %s843_s27 = smov [#allocation7]   ;;  %s725_s9 = scalar_lea.hbm %s1023_s2, 1024 }
   0x4   :  { %s33_s28 = sshll.u32 %s843_s27, 4  ;;  %p726_p0 = scmp.ne.s32.totalorder %s1023_s2, %s725_s9  ;;  %s34_s28 = int_to_ptr.vmem [resolvable:$true] %s33_s28 }
   0x5   :  { %p729_p1 = scmp.lt.u32.totalorder %s725_s9, %s1023_s2 }
   0x7   :  { %p731_p2 = pnand %p729_p1, %p726_p0 }
   0x9   :  { %734 = shalt.err (!%p731_p2)
}
   0xa   :  { %s735_s14 = scalar_lea.vmem %s34_s28, 1024  ;;  %p740_p4 = scmp.lt.s32.totalorder %s34_s28, %s34_s28 }
   0xb   :  { %p736_p3 = scmp.ne.s32.totalorder %s34_s28, %s735_s14  ;;  %p741_p5 = scmp.lt.s32.totalorder %s735_s14, %s735_s14 }
   0xd   :  { %p742_p6 = por %p741_p5, %p740_p4 }
   0xf   :  { %p743_p7 = pnand %p742_p6, %p736_p3 }
  0x11   :  { %746 = shalt.err (!%p743_p7)
}
  0x12   :  { %s844_s15 = smov 64   ;;  %s845_s16 = smov 4  }
  0x13   :  { %39 = dma.hbm_to_vmem [thread:$0]  %s1023_s2, 1024, %s34_s28, [#allocation8], %s844_s15, %s844_s15, %s845_s16  }
  0x14   :  { %s846_s19 = smov [#allocation4]   ;;  %s847_s21 = smov [#allocation9]  }
  0x15   :  { %s24_s20 = sshll.u32 %s846_s19, 4  ;;  %s47_s22 = sshll.u32 %s847_s21, 4  ;;  %s25_s20 = int_to_ptr.vmem [resolvable:$true] %s24_s20  ;;  %s48_s22 = int_to_ptr.vmem [resolvable:$true] %s47_s22 }
  0x16   :  { %s747_s25 = scalar_lea.hbm %s1022_s1, 64 }
  0x17   :  { %p748_p8 = scmp.ne.s32.totalorder %s1022_s1, %s747_s25  ;;  %p751_p9 = scmp.lt.u32.totalorder %s747_s25, %s1022_s1 }
  0x19   :  { %p753_p10 = pnand %p751_p9, %p748_p8 }
  0x1b   :  { %756 = shalt.err (!%p753_p10)
}
  0x1c   :  { %s757_s2 = scalar_lea.vmem %s25_s20, 64  ;;  %p762_p12 = scmp.lt.s32.totalorder %s25_s20, %s25_s20 }
  0x1d   :  { %p758_p11 = scmp.ne.s32.totalorder %s25_s20, %s757_s2  ;;  %p763_p13 = scmp.lt.s32.totalorder %s757_s2, %s757_s2 }
  0x1f   :  { %p764_p0 = por %p763_p13, %p762_p12 }
  0x21   :  { %p765_p1 = pnand %p764_p0, %p758_p11 }
  0x23   :  { %768 = shalt.err (!%p765_p1)
}
  0x24   :  { %27 = dma.hbm_to_vmem [thread:$0]  %s1022_s1, 64, %s25_s20, [#allocation5]  }
  0x25   :  { %s769_s12 = scalar_lea.hbm %s1025_s4, 1024 }
  0x26   :  { %p770_p2 = scmp.ne.s32.totalorder %s1025_s4, %s769_s12  ;;  %p773_p3 = scmp.lt.u32.totalorder %s769_s12, %s1025_s4 }
  0x28   :  { %p775_p4 = pnand %p773_p3, %p770_p2 }
  0x2a   :  { %778 = shalt.err (!%p775_p4)
}
  0x2b   :  { %s779_s19 = scalar_lea.vmem %s48_s22, 1024  ;;  %p784_p6 = scmp.lt.s32.totalorder %s48_s22, %s48_s22 }
  0x2c   :  { %p780_p5 = scmp.ne.s32.totalorder %s48_s22, %s779_s19  ;;  %p785_p7 = scmp.lt.s32.totalorder %s779_s19, %s779_s19 }
  0x2e   :  { %p786_p8 = por %p785_p7, %p784_p6 }
  0x30   :  { %p787_p9 = pnand %p786_p8, %p780_p5 }
  0x32   :  { %790 = shalt.err (!%p787_p9)
}
  0x33   :  { %53 = dma.hbm_to_vmem [thread:$0]  %s1025_s4, 1024, %s48_s22, [#allocation8], %s844_s15, %s844_s15, %s845_s16  }
  0x34   :  { %s848_s21 = smov [#allocation10]   ;;  %s791_s26 = scalar_lea.hbm %s1027_s6, 1024 }
  0x35   :  { %s61_s23 = sshll.u32 %s848_s21, 4  ;;  %p792_p10 = scmp.ne.s32.totalorder %s1027_s6, %s791_s26  ;;  %s62_s23 = int_to_ptr.vmem [resolvable:$true] %s61_s23 }
  0x36   :  { %p795_p11 = scmp.lt.u32.totalorder %s791_s26, %s1027_s6 }
  0x38   :  { %p797_p12 = pnand %p795_p11, %p792_p10 }
  0x3a   :  { %800 = shalt.err (!%p797_p12)
}
  0x3b   :  { %s801_s28 = scalar_lea.vmem %s62_s23, 1024  ;;  %p806_p0 = scmp.lt.s32.totalorder %s62_s23, %s62_s23 }
  0x3c   :  { %p802_p13 = scmp.ne.s32.totalorder %s62_s23, %s801_s28  ;;  %p807_p1 = scmp.lt.s32.totalorder %s801_s28, %s801_s28 }
  0x3e   :  { %p808_p2 = por %p807_p1, %p806_p0 }
  0x40   :  { %p809_p3 = pnand %p808_p2, %p802_p13 }
  0x42   :  { %812 = shalt.err (!%p809_p3)
}
  0x43   :  { %67 = dma.hbm_to_vmem [thread:$0]  %s1027_s6, 1024, %s62_s23, [#allocation11], %s844_s15, %s844_s15, %s845_s16  }
  0x44   :  { %835 = dma.done.wait [#allocation5], 64  }
  0x45   :  { %836 = vsyncadd [#allocation5], 4294967232 }
  0x46   :  { %837 = dma.done.wait [#allocation8], 2048  }
  0x47   :  { %838 = vsyncadd [#allocation8], 4294965248 }
  0x48   :  { %839 = dma.done.wait [#allocation11], 1024  }
  0x49   :  { %840 = vsyncadd [#allocation11], 4294966272  ;;  %v197_v0 = vlaneseq  ;;  %v957_v1 = vstv %s1021_s0  ;;  %v849_v2 = vmov 0.0   ;;  %vm850_vm0 = vmmov 0   ;;  %v701_v8 = vld [vmem:[#allocation7] sm:$0xff]   ;;  %v702_v10 = vld [vmem:[#allocation7 + $0x8] sm:$0xff]  }
  0x4a   :  { %632 = vmatprep.subr.bf16.mxu0 %v849_v2  ;;  %648 = vmatprep.mubr.msk.bf16.mxu0 %vm850_vm0, %v849_v2  ;;  %v703_v14 = vld [vmem:[#allocation7 + $0x10] sm:$0xff]   ;;  %v709_v17 = vld [vmem:[#allocation9] sm:$0xff]   ;;  %v704_v18 = vld [vmem:[#allocation7 + $0x18] sm:$0xff]   ;;  %v972_v26 = vxor.u32 466688986, %v957_v1  ;;  %s851_s12 = smov [#allocation12]  }
  0x4b   :  { %652 = vmatprep.subr.bf16.mxu1 %v849_v2  ;;  %v203_v3 = vadd.s32 %v957_v1, %v197_v0  ;;  %668 = vmatprep.mubr.msk.bf16.mxu1 %vm850_vm0, %v849_v2  ;;  %v710_v20 = vld [vmem:[#allocation9 + $0x8] sm:$0xff]   ;;  %v705_v24 = vld [vmem:[#allocation7 + $0x20] sm:$0xff]   ;;  %v711_v25 = vld [vmem:[#allocation9 + $0x10] sm:$0xff]   ;;  %s561_s13 = sshll.u32 %s851_s12, 4  ;;  %s562_s13 = int_to_ptr.vmem [resolvable:$true] %s561_s13 }
  0x4c   :  { %633 = vmatpush3.bf16.msra.mxu0 %v701_v8  ;;  %653 = vmatpush3.bf16.msra.mxu1 %v709_v17  ;;  %v706_v28 = vld [vmem:[#allocation7 + $0x28] sm:$0xff]   ;;  %v712_v29 = vld [vmem:[#allocation9 + $0x18] sm:$0xff]   ;;  %v707_v35 = vld [vmem:[#allocation7 + $0x30] sm:$0xff]   ;;  %p818_p5 = scmp.lt.s32.totalorder %s562_s13, %s562_s13 }
  0x4d   :  { %v204_v4 = vadd.s32 %v203_v3, %v197_v0  ;;  %v205_v5 = vshll.u32 %v203_v3, 13  ;;  %v206_v6 = vshrl.u32 %v203_v3, 19  ;;  %634 = vmatprep.subr.bf16.mxu0 %v849_v2  ;;  %654 = vmatprep.subr.bf16.mxu1 %v849_v2  ;;  %v713_v36 = vld [vmem:[#allocation9 + $0x20] sm:$0xff]   ;;  %v708_v40 = vld [vmem:[#allocation7 + $0x38] sm:$0xff]   ;;  %v714_v41 = vld [vmem:[#allocation9 + $0x28] sm:$0xff]  }
  0x4e   :  { %v83_v46 = vld [vmem:[#allocation4] sm:$0xf] }
  0x4f   :  { %v207_v7 = vor.u32 %v206_v6, %v205_v5 }
  0x50   :  { %635 = vmatpush3.bf16.msra.mxu0 %v702_v10  ;;  %655 = vmatpush3.bf16.msra.mxu1 %v710_v20 }
  0x51   :  { %v208_v9 = vxor.u32 %v207_v7, %v204_v4  ;;  %636 = vmatprep.subr.bf16.mxu0 %v849_v2  ;;  %656 = vmatprep.subr.bf16.mxu1 %v849_v2 }
  0x53   :  { %v210_v11 = vshll.u32 %v208_v9, 15  ;;  %v209_v12 = vadd.s32 %v208_v9, %v204_v4  ;;  %v211_v13 = vshrl.u32 %v208_v9, 17 }
  0x54   :  { %637 = vmatpush3.bf16.msra.mxu0 %v703_v14  ;;  %657 = vmatpush3.bf16.msra.mxu1 %v711_v25 }
  0x55   :  { %v212_v15 = vor.u32 %v211_v13, %v210_v11  ;;  %638 = vmatprep.subr.bf16.mxu0 %v849_v2  ;;  %658 = vmatprep.subr.bf16.mxu1 %v849_v2 }
  0x57   :  { %v213_v16 = vxor.u32 %v212_v15, %v209_v12 }
  0x58   :  { %639 = vmatpush3.bf16.msra.mxu0 %v704_v18  ;;  %659 = vmatpush3.bf16.msra.mxu1 %v712_v29 }
  0x59   :  { %v215_v19 = vshll.u32 %v213_v16, 26  ;;  %v214_v21 = vadd.s32 %v213_v16, %v209_v12  ;;  %v216_v22 = vshrl.u32 %v213_v16, 6  ;;  %640 = vmatprep.subr.bf16.mxu0 %v849_v2  ;;  %660 = vmatprep.subr.bf16.mxu1 %v849_v2 }
  0x5b   :  { %v217_v23 = vor.u32 %v216_v22, %v215_v19 }
  0x5c   :  { %641 = vmatpush3.bf16.msra.mxu0 %v705_v24  ;;  %661 = vmatpush3.bf16.msra.mxu1 %v713_v36 }
  0x5d   :  { %v218_v27 = vxor.u32 %v217_v23, %v214_v21  ;;  %642 = vmatprep.subr.bf16.mxu0 %v849_v2  ;;  %662 = vmatprep.subr.bf16.mxu1 %v849_v2 }
  0x5f   :  { %v219_v30 = vadd.s32 %v218_v27, %v214_v21  ;;  %v220_v31 = vshll.u32 %v218_v27, 6  ;;  %v221_v32 = vshrl.u32 %v218_v27, 26 }
  0x60   :  { %643 = vmatpush3.bf16.msra.mxu0 %v706_v28  ;;  %663 = vmatpush3.bf16.msra.mxu1 %v714_v41 }
  0x61   :  { %v222_v33 = vor.u32 %v221_v32, %v220_v31  ;;  %644 = vmatprep.subr.bf16.mxu0 %v849_v2  ;;  %v224_v37 = vadd.s32 %v219_v30, %v957_v1  ;;  %664 = vmatprep.subr.bf16.mxu1 %v849_v2 }
  0x63   :  { %v223_v34 = vxor.u32 %v222_v33, %v219_v30 }
  0x64   :  { %645 = vmatpush3.bf16.msra.mxu0 %v707_v35 }
  0x65   :  { %v225_v38 = vadd.s32 %v223_v34, %v972_v26  ;;  %646 = vmatprep.subr.bf16.mxu0 %v849_v2 }
  0x67   :  { %v226_v39 = vadd.s32 1, %v225_v38 }
  0x68   :  { %647 = vmatpush3.bf16.msra.mxu0 %v708_v40 }
  0x69   :  { %v227_v42 = vadd.s32 %v226_v39, %v224_v37  ;;  %v228_v43 = vshll.u32 %v226_v39, 17  ;;  %v229_v44 = vshrl.u32 %v226_v39, 15  ;;  %672 = vmatprep.subr.bf16.mxu0 %v849_v2 }
  0x6b   :  { %v230_v45 = vor.u32 %v229_v44, %v228_v43  ;;  %649 = vmatmul.mubr.bf16.vlgmr.msra.gmra.mrb[0].mxu0 %v83_v46 }
  0x6c   :  { %688 = vmatprep.mubr.msk.bf16.mxu0 %vm850_vm0, %v849_v2 }
  0x6d   :  { %v231_v47 = vxor.u32 %v230_v45, %v227_v42 }
  0x6f   :  { %v232_v48 = vadd.s32 %v231_v47, %v227_v42  ;;  %v233_v49 = vshll.u32 %v231_v47, 29  ;;  %v234_v50 = vshrl.u32 %v231_v47, 3 }
  0x71   :  { %v235_v51 = vor.u32 %v234_v50, %v233_v49 }
  0x73   :  { %v236_v52 = vxor.u32 %v235_v51, %v232_v48 }
  0x75   :  { %v237_v53 = vadd.s32 %v236_v52, %v232_v48  ;;  %v238_v54 = vshll.u32 %v236_v52, 16  ;;  %v239_v55 = vshrl.u32 %v236_v52, 16 }
  0x77   :  { %v240_v56 = vor.u32 %v239_v55, %v238_v54  ;;  %v715_v54 = vld [vmem:[#allocation9 + $0x30] sm:$0xff]  }
  0x78   :  { %665 = vmatpush3.bf16.msra.mxu1 %v715_v54 }
  0x79   :  { %v241_v57 = vxor.u32 %v240_v56, %v237_v53  ;;  %666 = vmatprep.subr.bf16.mxu1 %v849_v2 }
  0x7b   :  { %v242_v58 = vadd.s32 %v241_v57, %v237_v53  ;;  %v243_v59 = vshll.u32 %v241_v57, 24  ;;  %v244_v60 = vshrl.u32 %v241_v57, 8 }
  0x7d   :  { %v245_v61 = vor.u32 %v244_v60, %v243_v59  ;;  %v247_v63 = vadd.s32 %v242_v58, %v972_v26  ;;  %v716_v59 = vld [vmem:[#allocation9 + $0x38] sm:$0xff]  }
  0x7e   :  { %667 = vmatpush3.bf16.msra.mxu1 %v716_v59 }
  0x7f   :  { %v246_v62 = vxor.u32 %v245_v61, %v242_v58 }
  0x81   :  { %v249_v0 = vadd.s32 2, %v246_v62 }
  0x83   :  { %v250_v3 = vadd.s32 %v249_v0, %v247_v63  ;;  %v251_v4 = vshll.u32 %v249_v0, 13  ;;  %v252_v5 = vshrl.u32 %v249_v0, 19  ;;  %v717_v0 = vld [vmem:[#allocation10] sm:$0xff]  }
  0x84   :  { %673 = vmatpush3.bf16.msra.mxu0 %v717_v0 }
  0x85   :  { %v253_v6 = vor.u32 %v252_v5, %v251_v4  ;;  %v718_v4 = vld [vmem:[#allocation10 + $0x8] sm:$0xff]   ;;  %674 = vmatprep.subr.bf16.mxu0 %v849_v2 }
  0x87   :  { %v254_v7 = vxor.u32 %v253_v6, %v250_v3 }
  0x88   :  { %675 = vmatpush3.bf16.msra.mxu0 %v718_v4 }
  0x89   :  { %v255_v8 = vadd.s32 %v254_v7, %v250_v3  ;;  %v256_v9 = vshll.u32 %v254_v7, 15  ;;  %v257_v10 = vshrl.u32 %v254_v7, 17  ;;  %676 = vmatprep.subr.bf16.mxu0 %v849_v2 }
  0x8b   :  { %v258_v11 = vor.u32 %v257_v10, %v256_v9  ;;  %v719_v9 = vld [vmem:[#allocation10 + $0x10] sm:$0xff]  }
  0x8c   :  { %677 = vmatpush3.bf16.msra.mxu0 %v719_v9 }
  0x8d   :  { %v259_v12 = vxor.u32 %v258_v11, %v255_v8  ;;  %678 = vmatprep.subr.bf16.mxu0 %v849_v2 }
  0x8f   :  { %v260_v13 = vadd.s32 %v259_v12, %v255_v8  ;;  %v261_v14 = vshll.u32 %v259_v12, 26  ;;  %v262_v15 = vshrl.u32 %v259_v12, 6 }
  0x91   :  { %v263_v16 = vor.u32 %v262_v15, %v261_v14  ;;  %v721_v15 = vld [vmem:[#allocation10 + $0x20] sm:$0xff]  }
  0x93   :  { %v264_v17 = vxor.u32 %v263_v16, %v260_v13  ;;  %v722_v16 = vld [vmem:[#allocation10 + $0x28] sm:$0xff]  }
  0x95   :  { %v265_v18 = vadd.s32 %v264_v17, %v260_v13  ;;  %v266_v19 = vshll.u32 %v264_v17, 6  ;;  %v267_v20 = vshrl.u32 %v264_v17, 26  ;;  %v720_v13 = vld [vmem:[#allocation10 + $0x18] sm:$0xff]  }
  0x96   :  { %679 = vmatpush3.bf16.msra.mxu0 %v720_v13 }
  0x97   :  { %v268_v21 = vor.u32 %v267_v20, %v266_v19  ;;  %680 = vmatprep.subr.bf16.mxu0 %v849_v2 }
  0x99   :  { %v269_v22 = vxor.u32 %v268_v21, %v265_v18 }
  0x9a   :  { %681 = vmatpush3.bf16.msra.mxu0 %v721_v15 }
  0x9b   :  { %v271_v23 = vadd.s32 %v269_v22, %v957_v1  ;;  %682 = vmatprep.subr.bf16.mxu0 %v849_v2 }
  0x9d   :  { %v272_v24 = vadd.s32 3, %v271_v23 }
  0x9e   :  { %683 = vmatpush3.bf16.msra.mxu0 %v722_v16 }
  0x9f   :  { %v273_v25 = vadd.s32 %v272_v24, %v265_v18  ;;  %v274_v27 = vshll.u32 %v272_v24, 17  ;;  %v275_v28 = vshrl.u32 %v272_v24, 15  ;;  %684 = vmatprep.subr.bf16.mxu0 %v849_v2  ;;  %v572_v18 = vld [vmem:[%s1024_s3] ss:$0 sm:$0xff] }
  0xa1   :  { %v276_v29 = vor.u32 %v275_v28, %v274_v27  ;;  %v723_v27 = vld [vmem:[#allocation10 + $0x30] sm:$0xff]   ;;  %v724_v28 = vld [vmem:[#allocation10 + $0x38] sm:$0xff]  }
  0xa2   :  { %685 = vmatpush3.bf16.msra.mxu0 %v723_v27 }
  0xa3   :  { %v277_v30 = vxor.u32 %v276_v29, %v273_v25  ;;  %686 = vmatprep.subr.bf16.mxu0 %v849_v2  ;;  %v593_v2 = vld [vmem:[%s1028_s7] ss:$0 sm:$0xff] }
  0xa5   :  { %v278_v31 = vadd.s32 %v277_v30, %v273_v25  ;;  %v279_v32 = vshll.u32 %v277_v30, 29  ;;  %v280_v33 = vshrl.u32 %v277_v30, 3 }
  0xa6   :  { %687 = vmatpush3.bf16.msra.mxu0 %v724_v28 }
  0xa7   :  { %v281_v34 = vor.u32 %v280_v33, %v279_v32 }
  0xa9   :  { %v282_v35 = vxor.u32 %v281_v34, %v278_v31 }
  0xab   :  { %v283_v36 = vadd.s32 %v282_v35, %v278_v31  ;;  %v284_v37 = vshll.u32 %v282_v35, 16  ;;  %v285_v38 = vshrl.u32 %v282_v35, 16  ;;  %v581_v31 = vld [vmem:[%s1026_s5] ss:$0 sm:$0xff]  ;;  %s813_s5 = scalar_lea.vmem %s562_s13, 128 }
  0xac   :  { %p814_p4 = scmp.ne.s32.totalorder %s562_s13, %s813_s5  ;;  %p819_p6 = scmp.lt.s32.totalorder %s813_s5, %s813_s5 }
  0xad   :  { %v286_v39 = vor.u32 %v285_v38, %v284_v37 }
  0xae   :  { %p820_p7 = por %p819_p6, %p818_p5 }
  0xaf   :  { %v287_v40 = vxor.u32 %v286_v39, %v283_v36 }
  0xb0   :  { %p821_p8 = pnand %p820_p7, %p814_p4 }
  0xb1   :  { %v288_v41 = vadd.s32 %v287_v40, %v283_v36  ;;  %v289_v42 = vshll.u32 %v287_v40, 24  ;;  %v290_v43 = vshrl.u32 %v287_v40, 8 }
  0xb3   :  { %v291_v44 = vor.u32 %v290_v43, %v289_v42  ;;  %v293_v46 = vadd.s32 %v288_v41, %v957_v1 }
  0xb5   :  { %v292_v45 = vxor.u32 %v291_v44, %v288_v41 }
  0xb7   :  { %v294_v47 = vadd.s32 %v292_v45, %v972_v26 }
  0xb9   :  { %v295_v48 = vadd.s32 4, %v294_v47 }
  0xbb   :  { %v296_v49 = vadd.s32 %v295_v48, %v293_v46  ;;  %v297_v50 = vshll.u32 %v295_v48, 13  ;;  %v298_v51 = vshrl.u32 %v295_v48, 19 }
  0xbd   :  { %v299_v52 = vor.u32 %v298_v51, %v297_v50 }
  0xbf   :  { %v300_v53 = vxor.u32 %v299_v52, %v296_v49 }
  0xc1   :  { %v301_v55 = vadd.s32 %v300_v53, %v296_v49  ;;  %v302_v56 = vshll.u32 %v300_v53, 15  ;;  %v303_v57 = vshrl.u32 %v300_v53, 17 }
  0xc3   :  { %v304_v58 = vor.u32 %v303_v57, %v302_v56 }
  0xc5   :  { %v305_v60 = vxor.u32 %v304_v58, %v301_v55 }
  0xc7   :  { %v306_v1 = vadd.s32 %v305_v60, %v301_v55  ;;  %v307_v61 = vshll.u32 %v305_v60, 26  ;;  %v308_v62 = vshrl.u32 %v305_v60, 6 }
  0xc9   :  { %v309_v63 = vor.u32 %v308_v62, %v307_v61 }
  0xcb   :  { %v310_v3 = vxor.u32 %v309_v63, %v306_v1 }
  0xcd   :  { %v311_v5 = vadd.s32 %v310_v3, %v306_v1  ;;  %v312_v6 = vshll.u32 %v310_v3, 6  ;;  %v313_v7 = vshrl.u32 %v310_v3, 26 }
  0xcf   :  { %v314_v8 = vor.u32 %v313_v7, %v312_v6  ;;  %v316_v11 = vadd.s32 %v311_v5, %v972_v26 }
  0xd1   :  { %v315_v10 = vxor.u32 %v314_v8, %v311_v5 }
  0xd3   :  { %v318_v12 = vadd.s32 5, %v315_v10 }
  0xd5   :  { %v319_v14 = vxor.u32 %v318_v12, %v316_v11 }
  0xd7   :  { %320 = set.rngseed %v319_v14 }
  0xd8   :  { %v321_v17 = vrng }
  0xd9   :  { %v322_v26 = vshrl.u32 %v321_v17, 1  ;;  %v438_v29 = vrng }
  0xda   :  { %v439_v30 = vshrl.u32 %v438_v29, 1 }
  0xdb   :  { %vm323_vm1 = vcmp.ge.s32.totalorder %v322_v26, 1073741824 }
  0xdc   :  { %vm590_vm2 = vmpackc.low %vm323_vm1, %vm323_vm1  ;;  %vm440_vm3 = vcmp.ge.s32.totalorder %v439_v30, 1073741824 }
  0xdd   :  { %vm602_vm4 = vmpackc.low %vm440_vm3, %vm440_vm3 }
 0x13e   :  { %v189_v19 = vpop.f32.mrb[0].mxu0 }
 0x13f   :  { %v190_v20 = vadd.f32 %v572_v18, %v189_v19  ;;  %v650_v21 = vpop.f32.mrb[1].mxu0 }
 0x140   :  { %v192_v22 = vpop.f32.mrb[2].mxu0 }
 0x141   :  { %v195_v23 = vmax.f32 %v190_v20, 0.0  ;;  %v651_v24 = vpop.f32.mrb[3].mxu0 }
 0x143   :  { %v591_v25 = vpack.c.bf16 %v195_v23, %v195_v23 }
 0x145   :  { %669 = vmatmul.mubr.msk.bf16.vlgmr.msra.gmra.mrb[0].mxu1 %vm590_vm2, %v591_v25 }
 0x218   :  { %v431_v32 = vpop.f32.mrb[0].mxu1 }
 0x219   :  { %v432_v33 = vadd.f32 %v581_v31, %v431_v32  ;;  %v670_v34 = vpop.f32.mrb[1].mxu1 }
 0x21a   :  { %v434_v35 = vpop.f32.mrb[2].mxu1 }
 0x21b   :  { %v437_v36 = vmax.f32 %v432_v33, 0.0  ;;  %v671_v37 = vpop.f32.mrb[3].mxu1 }
 0x21d   :  { %v603_v38 = vpack.c.bf16 %v437_v36, %v437_v36 }
 0x21f   :  { %689 = vmatmul.mubr.msk.bf16.vlgmr.msra.gmra.mrb[4].mxu0 %vm602_vm4, %v603_v38 }
 0x2f2   :  { %v548_v39 = vpop.f32.mrb[4].mxu0 }
 0x2f3   :  { %v549_v40 = vadd.f32 %v593_v2, %v548_v39  ;;  %v690_v41 = vpop.f32.mrb[5].mxu0 }
 0x2f4   :  { %v551_v42 = vpop.f32.mrb[6].mxu0 }
 0x2f5   :  { %554 = vst [vmem:[#allocation12] sm:$0xff] %v549_v40  ;;  %v691_v43 = vpop.f32.mrb[7].mxu0 }
 0x2f6   :  { %824 = shalt.err (!%p821_p8)
}
 0x2f7   :  { %s825_s7 = scalar_lea.hbm %s1029_s8, 128 }
 0x2f8   :  { %p826_p9 = scmp.ne.s32.totalorder %s1029_s8, %s825_s7  ;;  %p829_p10 = scmp.lt.u32.totalorder %s825_s7, %s1029_s8 }
 0x2fa   :  { %p831_p11 = pnand %p829_p10, %p826_p9 }
 0x2fc   :  { %834 = shalt.err (!%p831_p11)
}
 0x2fd   :  { %564 = dma.vmem_to_hbm [thread:$0]  %s562_s13, 128, %s1029_s8, [#allocation6]  }
 0x2fe   :  { %841 = dma.done.wait [#allocation6], 128  }
 0x2ff   :  { %842 = vsyncadd [#allocation6], 4294967168 }
 0x300   :  { %568 = vsyncpa [#allocation5], 1 }
 0x301   :  { %569 = vsyncpa [#allocation8], 1 }
 0x302   :  { %570 = vsyncpa [#allocation11], 1 }
 0x303   :  { %571 = vsyncpa [#allocation6], 1 }

// kernel: tpu_custom_call.1
= control target key start
LH: loop header
LB: loop body
LE: loop exit
PB: predicated region body
PF: predicated region fallthrough
CT: control target
= control target key end

     0   :  { %14 = vsyncpa [#allocation5], 0  ;;  %s1021_s0 = inlined_call_operand.<no memory space> [shape: s32[1], index: 0, kind: input, shape index: {}]   ;;  %s1022_s1 = inlined_call_operand.hbm [shape: bf16[8,128], index: 1, kind: input, shape index: {}]   ;;  %s1023_s2 = inlined_call_operand.hbm [shape: bf16[128,128], index: 2, kind: input, shape index: {}]   ;;  %s1024_s3 = inlined_call_operand.vmem [shape: f32[1,128], index: 3, kind: input, shape index: {}]   ;;  %s1025_s4 = inlined_call_operand.hbm [shape: bf16[128,128], index: 4, kind: input, shape index: {}]   ;;  %s1026_s5 = inlined_call_operand.vmem [shape: f32[1,128], index: 5, kind: input, shape index: {}]   ;;  %s1027_s6 = inlined_call_operand.hbm [shape: bf16[128,128], index: 6, kind: input, shape index: {}]   ;;  %s1028_s7 = inlined_call_operand.vmem [shape: f32[1,128], index: 7, kind: input, shape index: {}]   ;;  %s1029_s8 = inlined_call_operand.hbm [shape: f32[8,128], index: 8, kind: output, shape index: {}]  }
   0x1   :  { %15 = vsyncpa [#allocation8], 0 }
   0x2   :  { %16 = vsyncpa [#allocation11], 0 }
   0x3   :  { %17 = vsyncpa [#allocation6], 0  ;;  %s843_s27 = smov [#allocation7]   ;;  %s725_s9 = scalar_lea.hbm %s1023_s2, 1024 }
   0x4   :  { %s33_s28 = sshll.u32 %s843_s27, 4  ;;  %p726_p0 = scmp.ne.s32.totalorder %s1023_s2, %s725_s9  ;;  %s34_s28 = int_to_ptr.vmem [resolvable:$true] %s33_s28 }
   0x5   :  { %p729_p1 = scmp.lt.u32.totalorder %s725_s9, %s1023_s2 }
   0x7   :  { %p731_p2 = pnand %p729_p1, %p726_p0 }
   0x9   :  { %734 = shalt.err (!%p731_p2)
}
   0xa   :  { %s735_s14 = scalar_lea.vmem %s34_s28, 1024  ;;  %p740_p4 = scmp.lt.s32.totalorder %s34_s28, %s34_s28 }
   0xb   :  { %p736_p3 = scmp.ne.s32.totalorder %s34_s28, %s735_s14  ;;  %p741_p5 = scmp.lt.s32.totalorder %s735_s14, %s735_s14 }
   0xd   :  { %p742_p6 = por %p741_p5, %p740_p4 }
   0xf   :  { %p743_p7 = pnand %p742_p6, %p736_p3 }
  0x11   :  { %746 = shalt.err (!%p743_p7)
}
  0x12   :  { %s844_s15 = smov 64   ;;  %s845_s16 = smov 4  }
  0x13   :  { %39 = dma.hbm_to_vmem [thread:$0]  %s1023_s2, 1024, %s34_s28, [#allocation8], %s844_s15, %s844_s15, %s845_s16  }
  0x14   :  { %s846_s19 = smov [#allocation4]   ;;  %s847_s21 = smov [#allocation9]  }
  0x15   :  { %s24_s20 = sshll.u32 %s846_s19, 4  ;;  %s47_s22 = sshll.u32 %s847_s21, 4  ;;  %s25_s20 = int_to_ptr.vmem [resolvable:$true] %s24_s20  ;;  %s48_s22 = int_to_ptr.vmem [resolvable:$true] %s47_s22 }
  0x16   :  { %s747_s25 = scalar_lea.hbm %s1022_s1, 64 }
  0x17   :  { %p748_p8 = scmp.ne.s32.totalorder %s1022_s1, %s747_s25  ;;  %p751_p9 = scmp.lt.u32.totalorder %s747_s25, %s1022_s1 }
  0x19   :  { %p753_p10 = pnand %p751_p9, %p748_p8 }
  0x1b   :  { %756 = shalt.err (!%p753_p10)
}
  0x1c   :  { %s757_s2 = scalar_lea.vmem %s25_s20, 64  ;;  %p762_p12 = scmp.lt.s32.totalorder %s25_s20, %s25_s20 }
  0x1d   :  { %p758_p11 = scmp.ne.s32.totalorder %s25_s20, %s757_s2  ;;  %p763_p13 = scmp.lt.s32.totalorder %s757_s2, %s757_s2 }
  0x1f   :  { %p764_p0 = por %p763_p13, %p762_p12 }
  0x21   :  { %p765_p1 = pnand %p764_p0, %p758_p11 }
  0x23   :  { %768 = shalt.err (!%p765_p1)
}
  0x24   :  { %27 = dma.hbm_to_vmem [thread:$0]  %s1022_s1, 64, %s25_s20, [#allocation5]  }
  0x25   :  { %s769_s12 = scalar_lea.hbm %s1025_s4, 1024 }
  0x26   :  { %p770_p2 = scmp.ne.s32.totalorder %s1025_s4, %s769_s12  ;;  %p773_p3 = scmp.lt.u32.totalorder %s769_s12, %s1025_s4 }
  0x28   :  { %p775_p4 = pnand %p773_p3, %p770_p2 }
  0x2a   :  { %778 = shalt.err (!%p775_p4)
}
  0x2b   :  { %s779_s19 = scalar_lea.vmem %s48_s22, 1024  ;;  %p784_p6 = scmp.lt.s32.totalorder %s48_s22, %s48_s22 }
  0x2c   :  { %p780_p5 = scmp.ne.s32.totalorder %s48_s22, %s779_s19  ;;  %p785_p7 = scmp.lt.s32.totalorder %s779_s19, %s779_s19 }
  0x2e   :  { %p786_p8 = por %p785_p7, %p784_p6 }
  0x30   :  { %p787_p9 = pnand %p786_p8, %p780_p5 }
  0x32   :  { %790 = shalt.err (!%p787_p9)
}
  0x33   :  { %53 = dma.hbm_to_vmem [thread:$0]  %s1025_s4, 1024, %s48_s22, [#allocation8], %s844_s15, %s844_s15, %s845_s16  }
  0x34   :  { %s848_s21 = smov [#allocation10]   ;;  %s791_s26 = scalar_lea.hbm %s1027_s6, 1024 }
  0x35   :  { %s61_s23 = sshll.u32 %s848_s21, 4  ;;  %p792_p10 = scmp.ne.s32.totalorder %s1027_s6, %s791_s26  ;;  %s62_s23 = int_to_ptr.vmem [resolvable:$true] %s61_s23 }
  0x36   :  { %p795_p11 = scmp.lt.u32.totalorder %s791_s26, %s1027_s6 }
  0x38   :  { %p797_p12 = pnand %p795_p11, %p792_p10 }
  0x3a   :  { %800 = shalt.err (!%p797_p12)
}
  0x3b   :  { %s801_s28 = scalar_lea.vmem %s62_s23, 1024  ;;  %p806_p0 = scmp.lt.s32.totalorder %s62_s23, %s62_s23 }
  0x3c   :  { %p802_p13 = scmp.ne.s32.totalorder %s62_s23, %s801_s28  ;;  %p807_p1 = scmp.lt.s32.totalorder %s801_s28, %s801_s28 }
  0x3e   :  { %p808_p2 = por %p807_p1, %p806_p0 }
  0x40   :  { %p809_p3 = pnand %p808_p2, %p802_p13 }
  0x42   :  { %812 = shalt.err (!%p809_p3)
}
  0x43   :  { %67 = dma.hbm_to_vmem [thread:$0]  %s1027_s6, 1024, %s62_s23, [#allocation11], %s844_s15, %s844_s15, %s845_s16  }
  0x44   :  { %835 = dma.done.wait [#allocation5], 64  }
  0x45   :  { %836 = vsyncadd [#allocation5], 4294967232 }
  0x46   :  { %837 = dma.done.wait [#allocation8], 2048  }
  0x47   :  { %838 = vsyncadd [#allocation8], 4294965248 }
  0x48   :  { %839 = dma.done.wait [#allocation11], 1024  }
  0x49   :  { %840 = vsyncadd [#allocation11], 4294966272  ;;  %v197_v0 = vlaneseq  ;;  %v957_v1 = vstv %s1021_s0  ;;  %v849_v2 = vmov 0.0   ;;  %vm850_vm0 = vmmov 0   ;;  %v701_v8 = vld [vmem:[#allocation7] sm:$0xff]   ;;  %v702_v10 = vld [vmem:[#allocation7 + $0x8] sm:$0xff]  }
  0x4a   :  { %632 = vmatprep.subr.bf16.mxu0 %v849_v2  ;;  %648 = vmatprep.mubr.msk.bf16.mxu0 %vm850_vm0, %v849_v2  ;;  %v703_v14 = vld [vmem:[#allocation7 + $0x10] sm:$0xff]   ;;  %v709_v17 = vld [vmem:[#allocation9] sm:$0xff]   ;;  %v704_v18 = vld [vmem:[#allocation7 + $0x18] sm:$0xff]   ;;  %v972_v26 = vxor.u32 466688986, %v957_v1  ;;  %s851_s12 = smov [#allocation12]  }
  0x4b   :  { %652 = vmatprep.subr.bf16.mxu1 %v849_v2  ;;  %v203_v3 = vadd.s32 %v957_v1, %v197_v0  ;;  %668 = vmatprep.mubr.msk.bf16.mxu1 %vm850_vm0, %v849_v2  ;;  %v710_v20 = vld [vmem:[#allocation9 + $0x8] sm:$0xff]   ;;  %v705_v24 = vld [vmem:[#allocation7 + $0x20] sm:$0xff]   ;;  %v711_v25 = vld [vmem:[#allocation9 + $0x10] sm:$0xff]   ;;  %s561_s13 = sshll.u32 %s851_s12, 4  ;;  %s562_s13 = int_to_ptr.vmem [resolvable:$true] %s561_s13 }
  0x4c   :  { %633 = vmatpush3.bf16.msra.mxu0 %v701_v8  ;;  %653 = vmatpush3.bf16.msra.mxu1 %v709_v17  ;;  %v706_v28 = vld [vmem:[#allocation7 + $0x28] sm:$0xff]   ;;  %v712_v29 = vld [vmem:[#allocation9 + $0x18] sm:$0xff]   ;;  %v707_v35 = vld [vmem:[#allocation7 + $0x30] sm:$0xff]   ;;  %p818_p5 = scmp.lt.s32.totalorder %s562_s13, %s562_s13 }
  0x4d   :  { %v204_v4 = vadd.s32 %v203_v3, %v197_v0  ;;  %v205_v5 = vshll.u32 %v203_v3, 13  ;;  %v206_v6 = vshrl.u32 %v203_v3, 19  ;;  %634 = vmatprep.subr.bf16.mxu0 %v849_v2  ;;  %654 = vmatprep.subr.bf16.mxu1 %v849_v2  ;;  %v713_v36 = vld [vmem:[#allocation9 + $0x20] sm:$0xff]   ;;  %v708_v40 = vld [vmem:[#allocation7 + $0x38] sm:$0xff]   ;;  %v714_v41 = vld [vmem:[#allocation9 + $0x28] sm:$0xff]  }
  0x4e   :  { %v83_v46 = vld [vmem:[#allocation4] sm:$0xf] }
  0x4f   :  { %v207_v7 = vor.u32 %v206_v6, %v205_v5 }
  0x50   :  { %635 = vmatpush3.bf16.msra.mxu0 %v702_v10  ;;  %655 = vmatpush3.bf16.msra.mxu1 %v710_v20 }
  0x51   :  { %v208_v9 = vxor.u32 %v207_v7, %v204_v4  ;;  %636 = vmatprep.subr.bf16.mxu0 %v849_v2  ;;  %656 = vmatprep.subr.bf16.mxu1 %v849_v2 }
  0x53   :  { %v210_v11 = vshll.u32 %v208_v9, 15  ;;  %v209_v12 = vadd.s32 %v208_v9, %v204_v4  ;;  %v211_v13 = vshrl.u32 %v208_v9, 17 }
  0x54   :  { %637 = vmatpush3.bf16.msra.mxu0 %v703_v14  ;;  %657 = vmatpush3.bf16.msra.mxu1 %v711_v25 }
  0x55   :  { %v212_v15 = vor.u32 %v211_v13, %v210_v11  ;;  %638 = vmatprep.subr.bf16.mxu0 %v849_v2  ;;  %658 = vmatprep.subr.bf16.mxu1 %v849_v2 }
  0x57   :  { %v213_v16 = vxor.u32 %v212_v15, %v209_v12 }
  0x58   :  { %639 = vmatpush3.bf16.msra.mxu0 %v704_v18  ;;  %659 = vmatpush3.bf16.msra.mxu1 %v712_v29 }
  0x59   :  { %v215_v19 = vshll.u32 %v213_v16, 26  ;;  %v214_v21 = vadd.s32 %v213_v16, %v209_v12  ;;  %v216_v22 = vshrl.u32 %v213_v16, 6  ;;  %640 = vmatprep.subr.bf16.mxu0 %v849_v2  ;;  %660 = vmatprep.subr.bf16.mxu1 %v849_v2 }
  0x5b   :  { %v217_v23 = vor.u32 %v216_v22, %v215_v19 }
  0x5c   :  { %641 = vmatpush3.bf16.msra.mxu0 %v705_v24  ;;  %661 = vmatpush3.bf16.msra.mxu1 %v713_v36 }
  0x5d   :  { %v218_v27 = vxor.u32 %v217_v23, %v214_v21  ;;  %642 = vmatprep.subr.bf16.mxu0 %v849_v2  ;;  %662 = vmatprep.subr.bf16.mxu1 %v849_v2 }
  0x5f   :  { %v219_v30 = vadd.s32 %v218_v27, %v214_v21  ;;  %v220_v31 = vshll.u32 %v218_v27, 6  ;;  %v221_v32 = vshrl.u32 %v218_v27, 26 }
  0x60   :  { %643 = vmatpush3.bf16.msra.mxu0 %v706_v28  ;;  %663 = vmatpush3.bf16.msra.mxu1 %v714_v41 }
  0x61   :  { %v222_v33 = vor.u32 %v221_v32, %v220_v31  ;;  %644 = vmatprep.subr.bf16.mxu0 %v849_v2  ;;  %v224_v37 = vadd.s32 %v219_v30, %v957_v1  ;;  %664 = vmatprep.subr.bf16.mxu1 %v849_v2 }
  0x63   :  { %v223_v34 = vxor.u32 %v222_v33, %v219_v30 }
  0x64   :  { %645 = vmatpush3.bf16.msra.mxu0 %v707_v35 }
  0x65   :  { %v225_v38 = vadd.s32 %v223_v34, %v972_v26  ;;  %646 = vmatprep.subr.bf16.mxu0 %v849_v2 }
  0x67   :  { %v226_v39 = vadd.s32 1, %v225_v38 }
  0x68   :  { %647 = vmatpush3.bf16.msra.mxu0 %v708_v40 }
  0x69   :  { %v227_v42 = vadd.s32 %v226_v39, %v224_v37  ;;  %v228_v43 = vshll.u32 %v226_v39, 17  ;;  %v229_v44 = vshrl.u32 %v226_v39, 15  ;;  %672 = vmatprep.subr.bf16.mxu0 %v849_v2 }
  0x6b   :  { %v230_v45 = vor.u32 %v229_v44, %v228_v43  ;;  %649 = vmatmul.mubr.bf16.vlgmr.msra.gmra.mrb[0].mxu0 %v83_v46 }
  0x6c   :  { %688 = vmatprep.mubr.msk.bf16.mxu0 %vm850_vm0, %v849_v2 }
  0x6d   :  { %v231_v47 = vxor.u32 %v230_v45, %v227_v42 }
  0x6f   :  { %v232_v48 = vadd.s32 %v231_v47, %v227_v42  ;;  %v233_v49 = vshll.u32 %v231_v47, 29  ;;  %v234_v50 = vshrl.u32 %v231_v47, 3 }
  0x71   :  { %v235_v51 = vor.u32 %v234_v50, %v233_v49 }
  0x73   :  { %v236_v52 = vxor.u32 %v235_v51, %v232_v48 }
  0x75   :  { %v237_v53 = vadd.s32 %v236_v52, %v232_v48  ;;  %v238_v54 = vshll.u32 %v236_v52, 16  ;;  %v239_v55 = vshrl.u32 %v236_v52, 16 }
  0x77   :  { %v240_v56 = vor.u32 %v239_v55, %v238_v54  ;;  %v715_v54 = vld [vmem:[#allocation9 + $0x30] sm:$0xff]  }
  0x78   :  { %665 = vmatpush3.bf16.msra.mxu1 %v715_v54 }
  0x79   :  { %v241_v57 = vxor.u32 %v240_v56, %v237_v53  ;;  %666 = vmatprep.subr.bf16.mxu1 %v849_v2 }
  0x7b   :  { %v242_v58 = vadd.s32 %v241_v57, %v237_v53  ;;  %v243_v59 = vshll.u32 %v241_v57, 24  ;;  %v244_v60 = vshrl.u32 %v241_v57, 8 }
  0x7d   :  { %v245_v61 = vor.u32 %v244_v60, %v243_v59  ;;  %v247_v63 = vadd.s32 %v242_v58, %v972_v26  ;;  %v716_v59 = vld [vmem:[#allocation9 + $0x38] sm:$0xff]  }
  0x7e   :  { %667 = vmatpush3.bf16.msra.mxu1 %v716_v59 }
  0x7f   :  { %v246_v62 = vxor.u32 %v245_v61, %v242_v58 }
  0x81   :  { %v249_v0 = vadd.s32 2, %v246_v62 }
  0x83   :  { %v250_v3 = vadd.s32 %v249_v0, %v247_v63  ;;  %v251_v4 = vshll.u32 %v249_v0, 13  ;;  %v252_v5 = vshrl.u32 %v249_v0, 19  ;;  %v717_v0 = vld [vmem:[#allocation10] sm:$0xff]  }
  0x84   :  { %673 = vmatpush3.bf16.msra.mxu0 %v717_v0 }
  0x85   :  { %v253_v6 = vor.u32 %v252_v5, %v251_v4  ;;  %v718_v4 = vld [vmem:[#allocation10 + $0x8] sm:$0xff]   ;;  %674 = vmatprep.subr.bf16.mxu0 %v849_v2 }
  0x87   :  { %v254_v7 = vxor.u32 %v253_v6, %v250_v3 }
  0x88   :  { %675 = vmatpush3.bf16.msra.mxu0 %v718_v4 }
  0x89   :  { %v255_v8 = vadd.s32 %v254_v7, %v250_v3  ;;  %v256_v9 = vshll.u32 %v254_v7, 15  ;;  %v257_v10 = vshrl.u32 %v254_v7, 17  ;;  %676 = vmatprep.subr.bf16.mxu0 %v849_v2 }
  0x8b   :  { %v258_v11 = vor.u32 %v257_v10, %v256_v9  ;;  %v719_v9 = vld [vmem:[#allocation10 + $0x10] sm:$0xff]  }
  0x8c   :  { %677 = vmatpush3.bf16.msra.mxu0 %v719_v9 }
  0x8d   :  { %v259_v12 = vxor.u32 %v258_v11, %v255_v8  ;;  %678 = vmatprep.subr.bf16.mxu0 %v849_v2 }
  0x8f   :  { %v260_v13 = vadd.s32 %v259_v12, %v255_v8  ;;  %v261_v14 = vshll.u32 %v259_v12, 26  ;;  %v262_v15 = vshrl.u32 %v259_v12, 6 }
  0x91   :  { %v263_v16 = vor.u32 %v262_v15, %v261_v14  ;;  %v721_v15 = vld [vmem:[#allocation10 + $0x20] sm:$0xff]  }
  0x93   :  { %v264_v17 = vxor.u32 %v263_v16, %v260_v13  ;;  %v722_v16 = vld [vmem:[#allocation10 + $0x28] sm:$0xff]  }
  0x95   :  { %v265_v18 = vadd.s32 %v264_v17, %v260_v13  ;;  %v266_v19 = vshll.u32 %v264_v17, 6  ;;  %v267_v20 = vshrl.u32 %v264_v17, 26  ;;  %v720_v13 = vld [vmem:[#allocation10 + $0x18] sm:$0xff]  }
  0x96   :  { %679 = vmatpush3.bf16.msra.mxu0 %v720_v13 }
  0x97   :  { %v268_v21 = vor.u32 %v267_v20, %v266_v19  ;;  %680 = vmatprep.subr.bf16.mxu0 %v849_v2 }
  0x99   :  { %v269_v22 = vxor.u32 %v268_v21, %v265_v18 }
  0x9a   :  { %681 = vmatpush3.bf16.msra.mxu0 %v721_v15 }
  0x9b   :  { %v271_v23 = vadd.s32 %v269_v22, %v957_v1  ;;  %682 = vmatprep.subr.bf16.mxu0 %v849_v2 }
  0x9d   :  { %v272_v24 = vadd.s32 3, %v271_v23 }
  0x9e   :  { %683 = vmatpush3.bf16.msra.mxu0 %v722_v16 }
  0x9f   :  { %v273_v25 = vadd.s32 %v272_v24, %v265_v18  ;;  %v274_v27 = vshll.u32 %v272_v24, 17  ;;  %v275_v28 = vshrl.u32 %v272_v24, 15  ;;  %684 = vmatprep.subr.bf16.mxu0 %v849_v2  ;;  %v572_v18 = vld [vmem:[%s1024_s3] ss:$0 sm:$0xff] }
  0xa1   :  { %v276_v29 = vor.u32 %v275_v28, %v274_v27  ;;  %v723_v27 = vld [vmem:[#allocation10 + $0x30] sm:$0xff]   ;;  %v724_v28 = vld [vmem:[#allocation10 + $0x38] sm:$0xff]  }
  0xa2   :  { %685 = vmatpush3.bf16.msra.mxu0 %v723_v27 }
  0xa3   :  { %v277_v30 = vxor.u32 %v276_v29, %v273_v25  ;;  %686 = vmatprep.subr.bf16.mxu0 %v849_v2  ;;  %v593_v2 = vld [vmem:[%s1028_s7] ss:$0 sm:$0xff] }
  0xa5   :  { %v278_v31 = vadd.s32 %v277_v30, %v273_v25  ;;  %v279_v32 = vshll.u32 %v277_v30, 29  ;;  %v280_v33 = vshrl.u32 %v277_v30, 3 }
  0xa6   :  { %687 = vmatpush3.bf16.msra.mxu0 %v724_v28 }
  0xa7   :  { %v281_v34 = vor.u32 %v280_v33, %v279_v32 }
  0xa9   :  { %v282_v35 = vxor.u32 %v281_v34, %v278_v31 }
  0xab   :  { %v283_v36 = vadd.s32 %v282_v35, %v278_v31  ;;  %v284_v37 = vshll.u32 %v282_v35, 16  ;;  %v285_v38 = vshrl.u32 %v282_v35, 16  ;;  %v581_v31 = vld [vmem:[%s1026_s5] ss:$0 sm:$0xff]  ;;  %s813_s5 = scalar_lea.vmem %s562_s13, 128 }
  0xac   :  { %p814_p4 = scmp.ne.s32.totalorder %s562_s13, %s813_s5  ;;  %p819_p6 = scmp.lt.s32.totalorder %s813_s5, %s813_s5 }
  0xad   :  { %v286_v39 = vor.u32 %v285_v38, %v284_v37 }
  0xae   :  { %p820_p7 = por %p819_p6, %p818_p5 }
  0xaf   :  { %v287_v40 = vxor.u32 %v286_v39, %v283_v36 }
  0xb0   :  { %p821_p8 = pnand %p820_p7, %p814_p4 }
  0xb1   :  { %v288_v41 = vadd.s32 %v287_v40, %v283_v36  ;;  %v289_v42 = vshll.u32 %v287_v40, 24  ;;  %v290_v43 = vshrl.u32 %v287_v40, 8 }
  0xb3   :  { %v291_v44 = vor.u32 %v290_v43, %v289_v42  ;;  %v293_v46 = vadd.s32 %v288_v41, %v957_v1 }
  0xb5   :  { %v292_v45 = vxor.u32 %v291_v44, %v288_v41 }
  0xb7   :  { %v294_v47 = vadd.s32 %v292_v45, %v972_v26 }
  0xb9   :  { %v295_v48 = vadd.s32 4, %v294_v47 }
  0xbb   :  { %v296_v49 = vadd.s32 %v295_v48, %v293_v46  ;;  %v297_v50 = vshll.u32 %v295_v48, 13  ;;  %v298_v51 = vshrl.u32 %v295_v48, 19 }
  0xbd   :  { %v299_v52 = vor.u32 %v298_v51, %v297_v50 }
  0xbf   :  { %v300_v53 = vxor.u32 %v299_v52, %v296_v49 }
  0xc1   :  { %v301_v55 = vadd.s32 %v300_v53, %v296_v49  ;;  %v302_v56 = vshll.u32 %v300_v53, 15  ;;  %v303_v57 = vshrl.u32 %v300_v53, 17 }
  0xc3   :  { %v304_v58 = vor.u32 %v303_v57, %v302_v56 }
  0xc5   :  { %v305_v60 = vxor.u32 %v304_v58, %v301_v55 }
  0xc7   :  { %v306_v1 = vadd.s32 %v305_v60, %v301_v55  ;;  %v307_v61 = vshll.u32 %v305_v60, 26  ;;  %v308_v62 = vshrl.u32 %v305_v60, 6 }
  0xc9   :  { %v309_v63 = vor.u32 %v308_v62, %v307_v61 }
  0xcb   :  { %v310_v3 = vxor.u32 %v309_v63, %v306_v1 }
  0xcd   :  { %v311_v5 = vadd.s32 %v310_v3, %v306_v1  ;;  %v312_v6 = vshll.u32 %v310_v3, 6  ;;  %v313_v7 = vshrl.u32 %v310_v3, 26 }
  0xcf   :  { %v314_v8 = vor.u32 %v313_v7, %v312_v6  ;;  %v316_v11 = vadd.s32 %v311_v5, %v972_v26 }
  0xd1   :  { %v315_v10 = vxor.u32 %v314_v8, %v311_v5 }
  0xd3   :  { %v318_v12 = vadd.s32 5, %v315_v10 }
  0xd5   :  { %v319_v14 = vxor.u32 %v318_v12, %v316_v11 }
  0xd7   :  { %320 = set.rngseed %v319_v14 }
  0xd8   :  { %v321_v17 = vrng }
  0xd9   :  { %v322_v26 = vshrl.u32 %v321_v17, 1  ;;  %v438_v29 = vrng }
  0xda   :  { %v439_v30 = vshrl.u32 %v438_v29, 1 }
  0xdb   :  { %vm323_vm1 = vcmp.ge.s32.totalorder %v322_v26, 1073741824 }
  0xdc   :  { %vm590_vm2 = vmpackc.low %vm323_vm1, %vm323_vm1  ;;  %vm440_vm3 = vcmp.ge.s32.totalorder %v439_v30, 1073741824 }
  0xdd   :  { %vm602_vm4 = vmpackc.low %vm440_vm3, %vm440_vm3 }
 0x13e   :  { %v189_v19 = vpop.f32.mrb[0].mxu0 }
 0x13f   :  { %v190_v20 = vadd.f32 %v572_v18, %v189_v19  ;;  %v650_v21 = vpop.f32.mrb[1].mxu0 }
 0x140   :  { %v192_v22 = vpop.f32.mrb[2].mxu0 }
 0x141   :  { %v195_v23 = vmax.f32 %v190_v20, 0.0  ;;  %v651_v24 = vpop.f32.mrb[3].mxu0 }
 0x143   :  { %v591_v25 = vpack.c.bf16 %v195_v23, %v195_v23 }
 0x145   :  { %669 = vmatmul.mubr.msk.bf16.vlgmr.msra.gmra.mrb[0].mxu1 %vm590_vm2, %v591_v25 }
 0x218   :  { %v431_v32 = vpop.f32.mrb[0].mxu1 }
 0x219   :  { %v432_v33 = vadd.f32 %v581_v31, %v431_v32  ;;  %v670_v34 = vpop.f32.mrb[1].mxu1 }
 0x21a   :  { %v434_v35 = vpop.f32.mrb[2].mxu1 }
 0x21b   :  { %v437_v36 = vmax.f32 %v432_v33, 0.0  ;;  %v671_v37 = vpop.f32.mrb[3].mxu1 }
 0x21d   :  { %v603_v38 = vpack.c.bf16 %v437_v36, %v437_v36 }
 0x21f   :  { %689 = vmatmul.mubr.msk.bf16.vlgmr.msra.gmra.mrb[4].mxu0 %vm602_vm4, %v603_v38 }
 0x2f2   :  { %v548_v39 = vpop.f32.mrb[4].mxu0 }
 0x2f3   :  { %v549_v40 = vadd.f32 %v593_v2, %v548_v39  ;;  %v690_v41 = vpop.f32.mrb[5].mxu0 }
 0x2f4   :  { %v551_v42 = vpop.f32.mrb[6].mxu0 }
 0x2f5   :  { %554 = vst [vmem:[#allocation12] sm:$0xff] %v549_v40  ;;  %v691_v43 = vpop.f32.mrb[7].mxu0 }
 0x2f6   :  { %824 = shalt.err (!%p821_p8)
}
 0x2f7   :  { %s825_s7 = scalar_lea.hbm %s1029_s8, 128 }
 0x2f8   :  { %p826_p9 = scmp.ne.s32.totalorder %s1029_s8, %s825_s7  ;;  %p829_p10 = scmp.lt.u32.totalorder %s825_s7, %s1029_s8 }
 0x2fa   :  { %p831_p11 = pnand %p829_p10, %p826_p9 }
 0x2fc   :  { %834 = shalt.err (!%p831_p11)
}
 0x2fd   :  { %564 = dma.vmem_to_hbm [thread:$0]  %s562_s13, 128, %s1029_s8, [#allocation6]  }
 0x2fe   :  { %841 = dma.done.wait [#allocation6], 128  }
 0x2ff   :  { %842 = vsyncadd [#allocation6], 4294967168 }
 0x300   :  { %568 = vsyncpa [#allocation5], 1 }
 0x301   :  { %569 = vsyncpa [#allocation8], 1 }
 0x302   :  { %570 = vsyncpa [#allocation11], 1 }
 0x303   :  { %571 = vsyncpa [#allocation6], 1 }

// kernel: tpu_custom_call.1
= control target key start
LH: loop header
LB: loop body
LE: loop exit
PB: predicated region body
PF: predicated region fallthrough
CT: control target
= control target key end

     0   :  { %14 = vsyncpa [#allocation5], 0  ;;  %s913_s0 = inlined_call_operand.<no memory space> [shape: s32[1], index: 0, kind: input, shape index: {}]   ;;  %s914_s1 = inlined_call_operand.hbm [shape: bf16[8,128], index: 1, kind: input, shape index: {}]   ;;  %s915_s2 = inlined_call_operand.hbm [shape: bf16[128,128], index: 2, kind: input, shape index: {}]   ;;  %s916_s3 = inlined_call_operand.vmem [shape: f32[1,128], index: 3, kind: input, shape index: {}]   ;;  %s917_s4 = inlined_call_operand.hbm [shape: bf16[128,128], index: 4, kind: input, shape index: {}]   ;;  %s918_s5 = inlined_call_operand.vmem [shape: f32[1,128], index: 5, kind: input, shape index: {}]   ;;  %s919_s6 = inlined_call_operand.hbm [shape: bf16[128,128], index: 6, kind: input, shape index: {}]   ;;  %s920_s7 = inlined_call_operand.vmem [shape: f32[1,128], index: 7, kind: input, shape index: {}]   ;;  %s921_s8 = inlined_call_operand.hbm [shape: f32[8,128], index: 8, kind: output, shape index: {}]  }
   0x1   :  { %15 = vsyncpa [#allocation8], 0 }
   0x2   :  { %16 = vsyncpa [#allocation11], 0 }
   0x3   :  { %17 = vsyncpa [#allocation6], 0  ;;  %s748_s27 = smov [#allocation7]   ;;  %s630_s9 = scalar_lea.hbm %s915_s2, 1024 }
   0x4   :  { %s33_s28 = sshll.u32 %s748_s27, 4  ;;  %p631_p0 = scmp.ne.s32.totalorder %s915_s2, %s630_s9  ;;  %s34_s28 = int_to_ptr.vmem [resolvable:$true] %s33_s28 }
   0x5   :  { %p634_p1 = scmp.lt.u32.totalorder %s630_s9, %s915_s2 }
   0x7   :  { %p636_p2 = pnand %p634_p1, %p631_p0 }
   0x9   :  { %639 = shalt.err (!%p636_p2)
}
   0xa   :  { %s640_s14 = scalar_lea.vmem %s34_s28, 1024  ;;  %p645_p4 = scmp.lt.s32.totalorder %s34_s28, %s34_s28 }
   0xb   :  { %p641_p3 = scmp.ne.s32.totalorder %s34_s28, %s640_s14  ;;  %p646_p5 = scmp.lt.s32.totalorder %s640_s14, %s640_s14 }
   0xd   :  { %p647_p6 = por %p646_p5, %p645_p4 }
   0xf   :  { %p648_p7 = pnand %p647_p6, %p641_p3 }
  0x11   :  { %651 = shalt.err (!%p648_p7)
}
  0x12   :  { %s749_s15 = smov 64   ;;  %s750_s16 = smov 4  }
  0x13   :  { %39 = dma.hbm_to_vmem [thread:$0]  %s915_s2, 1024, %s34_s28, [#allocation8], %s749_s15, %s749_s15, %s750_s16  }
  0x14   :  { %s751_s19 = smov [#allocation4]   ;;  %s752_s21 = smov [#allocation9]  }
  0x15   :  { %s24_s20 = sshll.u32 %s751_s19, 4  ;;  %s47_s22 = sshll.u32 %s752_s21, 4  ;;  %s25_s20 = int_to_ptr.vmem [resolvable:$true] %s24_s20  ;;  %s48_s22 = int_to_ptr.vmem [resolvable:$true] %s47_s22 }
  0x16   :  { %s652_s25 = scalar_lea.hbm %s914_s1, 64 }
  0x17   :  { %p653_p8 = scmp.ne.s32.totalorder %s914_s1, %s652_s25  ;;  %p656_p9 = scmp.lt.u32.totalorder %s652_s25, %s914_s1 }
  0x19   :  { %p658_p10 = pnand %p656_p9, %p653_p8 }
  0x1b   :  { %661 = shalt.err (!%p658_p10)
}
  0x1c   :  { %s662_s2 = scalar_lea.vmem %s25_s20, 64  ;;  %p667_p12 = scmp.lt.s32.totalorder %s25_s20, %s25_s20 }
  0x1d   :  { %p663_p11 = scmp.ne.s32.totalorder %s25_s20, %s662_s2  ;;  %p668_p13 = scmp.lt.s32.totalorder %s662_s2, %s662_s2 }
  0x1f   :  { %p669_p0 = por %p668_p13, %p667_p12 }
  0x21   :  { %p670_p1 = pnand %p669_p0, %p663_p11 }
  0x23   :  { %673 = shalt.err (!%p670_p1)
}
  0x24   :  { %27 = dma.hbm_to_vmem [thread:$0]  %s914_s1, 64, %s25_s20, [#allocation5]  }
  0x25   :  { %s674_s12 = scalar_lea.hbm %s917_s4, 1024 }
  0x26   :  { %p675_p2 = scmp.ne.s32.totalorder %s917_s4, %s674_s12  ;;  %p678_p3 = scmp.lt.u32.totalorder %s674_s12, %s917_s4 }
  0x28   :  { %p680_p4 = pnand %p678_p3, %p675_p2 }
  0x2a   :  { %683 = shalt.err (!%p680_p4)
}
  0x2b   :  { %s684_s19 = scalar_lea.vmem %s48_s22, 1024  ;;  %p689_p6 = scmp.lt.s32.totalorder %s48_s22, %s48_s22 }
  0x2c   :  { %p685_p5 = scmp.ne.s32.totalorder %s48_s22, %s684_s19  ;;  %p690_p7 = scmp.lt.s32.totalorder %s684_s19, %s684_s19 }
  0x2e   :  { %p691_p8 = por %p690_p7, %p689_p6 }
  0x30   :  { %p692_p9 = pnand %p691_p8, %p685_p5 }
  0x32   :  { %695 = shalt.err (!%p692_p9)
}
  0x33   :  { %53 = dma.hbm_to_vmem [thread:$0]  %s917_s4, 1024, %s48_s22, [#allocation8], %s749_s15, %s749_s15, %s750_s16  }
  0x34   :  { %s753_s21 = smov [#allocation10]   ;;  %s696_s26 = scalar_lea.hbm %s919_s6, 1024 }
  0x35   :  { %s61_s23 = sshll.u32 %s753_s21, 4  ;;  %p697_p10 = scmp.ne.s32.totalorder %s919_s6, %s696_s26  ;;  %s62_s23 = int_to_ptr.vmem [resolvable:$true] %s61_s23 }
  0x36   :  { %p700_p11 = scmp.lt.u32.totalorder %s696_s26, %s919_s6 }
  0x38   :  { %p702_p12 = pnand %p700_p11, %p697_p10 }
  0x3a   :  { %705 = shalt.err (!%p702_p12)
}
  0x3b   :  { %s706_s28 = scalar_lea.vmem %s62_s23, 1024  ;;  %p711_p0 = scmp.lt.s32.totalorder %s62_s23, %s62_s23 }
  0x3c   :  { %p707_p13 = scmp.ne.s32.totalorder %s62_s23, %s706_s28  ;;  %p712_p1 = scmp.lt.s32.totalorder %s706_s28, %s706_s28 }
  0x3e   :  { %p713_p2 = por %p712_p1, %p711_p0 }
  0x40   :  { %p714_p3 = pnand %p713_p2, %p707_p13 }
  0x42   :  { %717 = shalt.err (!%p714_p3)
}
  0x43   :  { %67 = dma.hbm_to_vmem [thread:$0]  %s919_s6, 1024, %s62_s23, [#allocation11], %s749_s15, %s749_s15, %s750_s16  }
  0x44   :  { %740 = dma.done.wait [#allocation5], 64  }
  0x45   :  { %741 = vsyncadd [#allocation5], 4294967232 }
  0x46   :  { %742 = dma.done.wait [#allocation8], 2048  }
  0x47   :  { %743 = vsyncadd [#allocation8], 4294965248 }
  0x48   :  { %744 = dma.done.wait [#allocation11], 1024  }
  0x49   :  { %745 = vsyncadd [#allocation11], 4294966272  ;;  %v754_v0 = vmov 0.0   ;;  %vm755_vm0 = vmmov 0   ;;  %v606_v1 = vld [vmem:[#allocation7] sm:$0xff]   ;;  %v607_v2 = vld [vmem:[#allocation7 + $0x8] sm:$0xff]   ;;  %v198_v24 = vlaneseq }
  0x4a   :  { %537 = vmatprep.subr.bf16.mxu0 %v754_v0  ;;  %553 = vmatprep.mubr.msk.bf16.mxu0 %vm755_vm0, %v754_v0  ;;  %v608_v3 = vld [vmem:[#allocation7 + $0x10] sm:$0xff]   ;;  %v614_v4 = vld [vmem:[#allocation9] sm:$0xff]   ;;  %v609_v5 = vld [vmem:[#allocation7 + $0x18] sm:$0xff]   ;;  %s207_s16 = smul.u32 2246822507, %s913_s0  ;;  %s756_s13 = smov [#allocation12]  }
  0x4b   :  { %557 = vmatprep.subr.bf16.mxu1 %v754_v0  ;;  %573 = vmatprep.mubr.msk.bf16.mxu1 %vm755_vm0, %v754_v0  ;;  %v615_v6 = vld [vmem:[#allocation9 + $0x8] sm:$0xff]   ;;  %v610_v7 = vld [vmem:[#allocation7 + $0x20] sm:$0xff]   ;;  %v616_v8 = vld [vmem:[#allocation9 + $0x10] sm:$0xff]   ;;  %v199_v25 = vshrl.u32 %v198_v24, 7  ;;  %v203_v26 = vand.u32 127, %v198_v24  ;;  %s466_s14 = sshll.u32 %s756_s13, 4  ;;  %s467_s14 = int_to_ptr.vmem [resolvable:$true] %s466_s14 }
  0x4c   :  { %538 = vmatpush3.bf16.msra.mxu0 %v606_v1  ;;  %558 = vmatpush3.bf16.msra.mxu1 %v614_v4  ;;  %v611_v9 = vld [vmem:[#allocation7 + $0x28] sm:$0xff]   ;;  %v617_v10 = vld [vmem:[#allocation9 + $0x18] sm:$0xff]   ;;  %v612_v11 = vld [vmem:[#allocation7 + $0x30] sm:$0xff]   ;;  %v208_v30 = vstv %s207_s16  ;;  %p723_p5 = scmp.lt.s32.totalorder %s467_s14, %s467_s14 }
  0x4d   :  { %539 = vmatprep.subr.bf16.mxu0 %v754_v0  ;;  %559 = vmatprep.subr.bf16.mxu1 %v754_v0  ;;  %v618_v12 = vld [vmem:[#allocation9 + $0x20] sm:$0xff]   ;;  %v613_v13 = vld [vmem:[#allocation7 + $0x38] sm:$0xff]   ;;  %v619_v14 = vld [vmem:[#allocation9 + $0x28] sm:$0xff]   ;;  %v204_v27 = vmul.u32 128, %v199_v25 }
  0x4e   :  { %v83_v15 = vld [vmem:[#allocation4] sm:$0xf]  ;;  %v620_v16 = vld [vmem:[#allocation9 + $0x30] sm:$0xff]   ;;  %v622_v18 = vld [vmem:[#allocation10] sm:$0xff]  }
  0x4f   :  { %v621_v17 = vld [vmem:[#allocation9 + $0x38] sm:$0xff]   ;;  %v623_v19 = vld [vmem:[#allocation10 + $0x8] sm:$0xff]   ;;  %v624_v20 = vld [vmem:[#allocation10 + $0x10] sm:$0xff]   ;;  %v205_v28 = vadd.s32 %v204_v27, %v203_v26 }
  0x50   :  { %540 = vmatpush3.bf16.msra.mxu0 %v607_v2  ;;  %560 = vmatpush3.bf16.msra.mxu1 %v615_v6  ;;  %v625_v21 = vld [vmem:[#allocation10 + $0x18] sm:$0xff]   ;;  %v626_v22 = vld [vmem:[#allocation10 + $0x20] sm:$0xff]   ;;  %v627_v23 = vld [vmem:[#allocation10 + $0x28] sm:$0xff]  }
  0x51   :  { %541 = vmatprep.subr.bf16.mxu0 %v754_v0  ;;  %561 = vmatprep.subr.bf16.mxu1 %v754_v0  ;;  %v206_v29 = vmul.u32 2654435761, %v205_v28  ;;  %v477_v42 = vld [vmem:[%s916_s3] ss:$0 sm:$0xff]  ;;  %v628_v50 = vld [vmem:[#allocation10 + $0x30] sm:$0xff]  }
  0x52   :  { %v629_v51 = vld [vmem:[#allocation10 + $0x38] sm:$0xff]  }
  0x53   :  { %v209_v31 = vxor.u32 %v208_v30, %v206_v29  ;;  %v486_v62 = vld [vmem:[%s918_s5] ss:$0 sm:$0xff]  ;;  %s718_s5 = scalar_lea.vmem %s467_s14, 128 }
  0x54   :  { %542 = vmatpush3.bf16.msra.mxu0 %v608_v3  ;;  %562 = vmatpush3.bf16.msra.mxu1 %v616_v8  ;;  %v498_v6 = vld [vmem:[%s920_s7] ss:$0 sm:$0xff]  ;;  %p719_p4 = scmp.ne.s32.totalorder %s467_s14, %s718_s5  ;;  %p724_p6 = scmp.lt.s32.totalorder %s718_s5, %s718_s5 }
  0x55   :  { %543 = vmatprep.subr.bf16.mxu0 %v754_v0  ;;  %563 = vmatprep.subr.bf16.mxu1 %v754_v0  ;;  %v210_v32 = vxor.u32 461845907, %v209_v31  ;;  %v335_v52 = vxor.u32 1390208809, %v209_v31 }
  0x56   :  { %p725_p7 = por %p724_p6, %p723_p5 }
  0x57   :  { %v211_v33 = vshrl.u32 %v210_v32, 16  ;;  %v336_v53 = vshrl.u32 %v335_v52, 16 }
  0x58   :  { %544 = vmatpush3.bf16.msra.mxu0 %v609_v5  ;;  %564 = vmatpush3.bf16.msra.mxu1 %v617_v10  ;;  %p726_p8 = pnand %p725_p7, %p719_p4 }
  0x59   :  { %545 = vmatprep.subr.bf16.mxu0 %v754_v0  ;;  %565 = vmatprep.subr.bf16.mxu1 %v754_v0  ;;  %v212_v34 = vxor.u32 %v211_v33, %v210_v32  ;;  %v337_v54 = vxor.u32 %v336_v53, %v335_v52 }
  0x5b   :  { %v213_v35 = vmul.u32 2146121005, %v212_v34  ;;  %v338_v55 = vmul.u32 2146121005, %v337_v54 }
  0x5c   :  { %546 = vmatpush3.bf16.msra.mxu0 %v610_v7  ;;  %566 = vmatpush3.bf16.msra.mxu1 %v618_v12 }
  0x5d   :  { %547 = vmatprep.subr.bf16.mxu0 %v754_v0  ;;  %567 = vmatprep.subr.bf16.mxu1 %v754_v0  ;;  %v214_v36 = vshrl.u32 %v213_v35, 15  ;;  %v339_v56 = vshrl.u32 %v338_v55, 15 }
  0x5f   :  { %v215_v37 = vxor.u32 %v214_v36, %v213_v35  ;;  %v340_v57 = vxor.u32 %v339_v56, %v338_v55 }
  0x60   :  { %548 = vmatpush3.bf16.msra.mxu0 %v611_v9  ;;  %568 = vmatpush3.bf16.msra.mxu1 %v619_v14 }
  0x61   :  { %549 = vmatprep.subr.bf16.mxu0 %v754_v0  ;;  %569 = vmatprep.subr.bf16.mxu1 %v754_v0  ;;  %v216_v38 = vmul.u32 2221713035, %v215_v37  ;;  %v341_v58 = vmul.u32 2221713035, %v340_v57 }
  0x63   :  { %v217_v39 = vshrl.u32 %v216_v38, 16  ;;  %v342_v59 = vshrl.u32 %v341_v58, 16 }
  0x64   :  { %550 = vmatpush3.bf16.msra.mxu0 %v612_v11  ;;  %570 = vmatpush3.bf16.msra.mxu1 %v620_v16 }
  0x65   :  { %551 = vmatprep.subr.bf16.mxu0 %v754_v0  ;;  %571 = vmatprep.subr.bf16.mxu1 %v754_v0  ;;  %v218_v40 = vxor.u32 %v217_v39, %v216_v38  ;;  %v343_v60 = vxor.u32 %v342_v59, %v341_v58 }
  0x67   :  { %v219_v41 = vshrl.u32 %v218_v40, 1  ;;  %v344_v61 = vshrl.u32 %v343_v60, 1 }
  0x68   :  { %552 = vmatpush3.bf16.msra.mxu0 %v613_v13  ;;  %572 = vmatpush3.bf16.msra.mxu1 %v621_v17 }
  0x69   :  { %577 = vmatprep.subr.bf16.mxu0 %v754_v0  ;;  %vm220_vm1 = vcmp.ge.s32.totalorder %v219_v41, 1073741824  ;;  %vm345_vm3 = vcmp.ge.s32.totalorder %v344_v61, 1073741824 }
  0x6a   :  { %vm495_vm2 = vmpackc.low %vm220_vm1, %vm220_vm1 }
  0x6b   :  { %554 = vmatmul.mubr.bf16.vlgmr.msra.gmra.mrb[0].mxu0 %v83_v15  ;;  %vm507_vm4 = vmpackc.low %vm345_vm3, %vm345_vm3 }
  0x6c   :  { %593 = vmatprep.mubr.msk.bf16.mxu0 %vm755_vm0, %v754_v0  ;;  %578 = vmatpush3.bf16.msra.mxu0 %v622_v18 }
  0x6d   :  { %579 = vmatprep.subr.bf16.mxu0 %v754_v0 }
  0x70   :  { %580 = vmatpush3.bf16.msra.mxu0 %v623_v19 }
  0x71   :  { %581 = vmatprep.subr.bf16.mxu0 %v754_v0 }
  0x74   :  { %582 = vmatpush3.bf16.msra.mxu0 %v624_v20 }
  0x75   :  { %583 = vmatprep.subr.bf16.mxu0 %v754_v0 }
  0x78   :  { %584 = vmatpush3.bf16.msra.mxu0 %v625_v21 }
  0x79   :  { %585 = vmatprep.subr.bf16.mxu0 %v754_v0 }
  0x7c   :  { %586 = vmatpush3.bf16.msra.mxu0 %v626_v22 }
  0x7d   :  { %587 = vmatprep.subr.bf16.mxu0 %v754_v0 }
  0x80   :  { %588 = vmatpush3.bf16.msra.mxu0 %v627_v23 }
  0x81   :  { %589 = vmatprep.subr.bf16.mxu0 %v754_v0 }
  0x84   :  { %590 = vmatpush3.bf16.msra.mxu0 %v628_v50 }
  0x85   :  { %591 = vmatprep.subr.bf16.mxu0 %v754_v0 }
  0x88   :  { %592 = vmatpush3.bf16.msra.mxu0 %v629_v51 }
 0x13e   :  { %v189_v43 = vpop.f32.mrb[0].mxu0 }
 0x13f   :  { %v190_v44 = vadd.f32 %v477_v42, %v189_v43  ;;  %v555_v45 = vpop.f32.mrb[1].mxu0 }
 0x140   :  { %v192_v46 = vpop.f32.mrb[2].mxu0 }
 0x141   :  { %v195_v47 = vmax.f32 %v190_v44, 0.0  ;;  %v556_v48 = vpop.f32.mrb[3].mxu0 }
 0x143   :  { %v496_v49 = vpack.c.bf16 %v195_v47, %v195_v47 }
 0x145   :  { %574 = vmatmul.mubr.msk.bf16.vlgmr.msra.gmra.mrb[0].mxu1 %vm495_vm2, %v496_v49 }
 0x218   :  { %v328_v63 = vpop.f32.mrb[0].mxu1 }
 0x219   :  { %v329_v1 = vadd.f32 %v486_v62, %v328_v63  ;;  %v575_v2 = vpop.f32.mrb[1].mxu1 }
 0x21a   :  { %v331_v0 = vpop.f32.mrb[2].mxu1 }
 0x21b   :  { %v334_v3 = vmax.f32 %v329_v1, 0.0  ;;  %v576_v4 = vpop.f32.mrb[3].mxu1 }
 0x21d   :  { %v508_v5 = vpack.c.bf16 %v334_v3, %v334_v3 }
 0x21f   :  { %594 = vmatmul.mubr.msk.bf16.vlgmr.msra.gmra.mrb[4].mxu0 %vm507_vm4, %v508_v5 }
 0x2f2   :  { %v453_v7 = vpop.f32.mrb[4].mxu0 }
 0x2f3   :  { %v454_v8 = vadd.f32 %v498_v6, %v453_v7  ;;  %v595_v9 = vpop.f32.mrb[5].mxu0 }
 0x2f4   :  { %v456_v10 = vpop.f32.mrb[6].mxu0 }
 0x2f5   :  { %459 = vst [vmem:[#allocation12] sm:$0xff] %v454_v8  ;;  %v596_v11 = vpop.f32.mrb[7].mxu0 }
 0x2f6   :  { %729 = shalt.err (!%p726_p8)
}
 0x2f7   :  { %s730_s7 = scalar_lea.hbm %s921_s8, 128 }
 0x2f8   :  { %p731_p9 = scmp.ne.s32.totalorder %s921_s8, %s730_s7  ;;  %p734_p10 = scmp.lt.u32.totalorder %s730_s7, %s921_s8 }
 0x2fa   :  { %p736_p11 = pnand %p734_p10, %p731_p9 }
 0x2fc   :  { %739 = shalt.err (!%p736_p11)
}
 0x2fd   :  { %469 = dma.vmem_to_hbm [thread:$0]  %s467_s14, 128, %s921_s8, [#allocation6]  }
 0x2fe   :  { %746 = dma.done.wait [#allocation6], 128  }
 0x2ff   :  { %747 = vsyncadd [#allocation6], 4294967168 }
 0x300   :  { %473 = vsyncpa [#allocation5], 1 }
 0x301   :  { %474 = vsyncpa [#allocation8], 1 }
 0x302   :  { %475 = vsyncpa [#allocation11], 1 }
 0x303   :  { %476 = vsyncpa [#allocation6], 1 }

// kernel: tpu_custom_call.1
= control target key start
LH: loop header
LB: loop body
LE: loop exit
PB: predicated region body
PF: predicated region fallthrough
CT: control target
= control target key end

     0   :  { %14 = vsyncpa [#allocation5], 0  ;;  %s913_s0 = inlined_call_operand.<no memory space> [shape: s32[1], index: 0, kind: input, shape index: {}]   ;;  %s914_s1 = inlined_call_operand.hbm [shape: bf16[8,128], index: 1, kind: input, shape index: {}]   ;;  %s915_s2 = inlined_call_operand.hbm [shape: bf16[128,128], index: 2, kind: input, shape index: {}]   ;;  %s916_s3 = inlined_call_operand.vmem [shape: f32[1,128], index: 3, kind: input, shape index: {}]   ;;  %s917_s4 = inlined_call_operand.hbm [shape: bf16[128,128], index: 4, kind: input, shape index: {}]   ;;  %s918_s5 = inlined_call_operand.vmem [shape: f32[1,128], index: 5, kind: input, shape index: {}]   ;;  %s919_s6 = inlined_call_operand.hbm [shape: bf16[128,128], index: 6, kind: input, shape index: {}]   ;;  %s920_s7 = inlined_call_operand.vmem [shape: f32[1,128], index: 7, kind: input, shape index: {}]   ;;  %s921_s8 = inlined_call_operand.hbm [shape: f32[8,128], index: 8, kind: output, shape index: {}]  }
   0x1   :  { %15 = vsyncpa [#allocation8], 0 }
   0x2   :  { %16 = vsyncpa [#allocation11], 0 }
   0x3   :  { %17 = vsyncpa [#allocation6], 0  ;;  %s748_s27 = smov [#allocation7]   ;;  %s630_s9 = scalar_lea.hbm %s915_s2, 1024 }
   0x4   :  { %s33_s28 = sshll.u32 %s748_s27, 4  ;;  %p631_p0 = scmp.ne.s32.totalorder %s915_s2, %s630_s9  ;;  %s34_s28 = int_to_ptr.vmem [resolvable:$true] %s33_s28 }
   0x5   :  { %p634_p1 = scmp.lt.u32.totalorder %s630_s9, %s915_s2 }
   0x7   :  { %p636_p2 = pnand %p634_p1, %p631_p0 }
   0x9   :  { %639 = shalt.err (!%p636_p2)
}
   0xa   :  { %s640_s14 = scalar_lea.vmem %s34_s28, 1024  ;;  %p645_p4 = scmp.lt.s32.totalorder %s34_s28, %s34_s28 }
   0xb   :  { %p641_p3 = scmp.ne.s32.totalorder %s34_s28, %s640_s14  ;;  %p646_p5 = scmp.lt.s32.totalorder %s640_s14, %s640_s14 }
   0xd   :  { %p647_p6 = por %p646_p5, %p645_p4 }
   0xf   :  { %p648_p7 = pnand %p647_p6, %p641_p3 }
  0x11   :  { %651 = shalt.err (!%p648_p7)
}
  0x12   :  { %s749_s15 = smov 64   ;;  %s750_s16 = smov 4  }
  0x13   :  { %39 = dma.hbm_to_vmem [thread:$0]  %s915_s2, 1024, %s34_s28, [#allocation8], %s749_s15, %s749_s15, %s750_s16  }
  0x14   :  { %s751_s19 = smov [#allocation4]   ;;  %s752_s21 = smov [#allocation9]  }
  0x15   :  { %s24_s20 = sshll.u32 %s751_s19, 4  ;;  %s47_s22 = sshll.u32 %s752_s21, 4  ;;  %s25_s20 = int_to_ptr.vmem [resolvable:$true] %s24_s20  ;;  %s48_s22 = int_to_ptr.vmem [resolvable:$true] %s47_s22 }
  0x16   :  { %s652_s25 = scalar_lea.hbm %s914_s1, 64 }
  0x17   :  { %p653_p8 = scmp.ne.s32.totalorder %s914_s1, %s652_s25  ;;  %p656_p9 = scmp.lt.u32.totalorder %s652_s25, %s914_s1 }
  0x19   :  { %p658_p10 = pnand %p656_p9, %p653_p8 }
  0x1b   :  { %661 = shalt.err (!%p658_p10)
}
  0x1c   :  { %s662_s2 = scalar_lea.vmem %s25_s20, 64  ;;  %p667_p12 = scmp.lt.s32.totalorder %s25_s20, %s25_s20 }
  0x1d   :  { %p663_p11 = scmp.ne.s32.totalorder %s25_s20, %s662_s2  ;;  %p668_p13 = scmp.lt.s32.totalorder %s662_s2, %s662_s2 }
  0x1f   :  { %p669_p0 = por %p668_p13, %p667_p12 }
  0x21   :  { %p670_p1 = pnand %p669_p0, %p663_p11 }
  0x23   :  { %673 = shalt.err (!%p670_p1)
}
  0x24   :  { %27 = dma.hbm_to_vmem [thread:$0]  %s914_s1, 64, %s25_s20, [#allocation5]  }
  0x25   :  { %s674_s12 = scalar_lea.hbm %s917_s4, 1024 }
  0x26   :  { %p675_p2 = scmp.ne.s32.totalorder %s917_s4, %s674_s12  ;;  %p678_p3 = scmp.lt.u32.totalorder %s674_s12, %s917_s4 }
  0x28   :  { %p680_p4 = pnand %p678_p3, %p675_p2 }
  0x2a   :  { %683 = shalt.err (!%p680_p4)
}
  0x2b   :  { %s684_s19 = scalar_lea.vmem %s48_s22, 1024  ;;  %p689_p6 = scmp.lt.s32.totalorder %s48_s22, %s48_s22 }
  0x2c   :  { %p685_p5 = scmp.ne.s32.totalorder %s48_s22, %s684_s19  ;;  %p690_p7 = scmp.lt.s32.totalorder %s684_s19, %s684_s19 }
  0x2e   :  { %p691_p8 = por %p690_p7, %p689_p6 }
  0x30   :  { %p692_p9 = pnand %p691_p8, %p685_p5 }
  0x32   :  { %695 = shalt.err (!%p692_p9)
}
  0x33   :  { %53 = dma.hbm_to_vmem [thread:$0]  %s917_s4, 1024, %s48_s22, [#allocation8], %s749_s15, %s749_s15, %s750_s16  }
  0x34   :  { %s753_s21 = smov [#allocation10]   ;;  %s696_s26 = scalar_lea.hbm %s919_s6, 1024 }
  0x35   :  { %s61_s23 = sshll.u32 %s753_s21, 4  ;;  %p697_p10 = scmp.ne.s32.totalorder %s919_s6, %s696_s26  ;;  %s62_s23 = int_to_ptr.vmem [resolvable:$true] %s61_s23 }
  0x36   :  { %p700_p11 = scmp.lt.u32.totalorder %s696_s26, %s919_s6 }
  0x38   :  { %p702_p12 = pnand %p700_p11, %p697_p10 }
  0x3a   :  { %705 = shalt.err (!%p702_p12)
}
  0x3b   :  { %s706_s28 = scalar_lea.vmem %s62_s23, 1024  ;;  %p711_p0 = scmp.lt.s32.totalorder %s62_s23, %s62_s23 }
  0x3c   :  { %p707_p13 = scmp.ne.s32.totalorder %s62_s23, %s706_s28  ;;  %p712_p1 = scmp.lt.s32.totalorder %s706_s28, %s706_s28 }
  0x3e   :  { %p713_p2 = por %p712_p1, %p711_p0 }
  0x40   :  { %p714_p3 = pnand %p713_p2, %p707_p13 }
  0x42   :  { %717 = shalt.err (!%p714_p3)
}
  0x43   :  { %67 = dma.hbm_to_vmem [thread:$0]  %s919_s6, 1024, %s62_s23, [#allocation11], %s749_s15, %s749_s15, %s750_s16  }
  0x44   :  { %740 = dma.done.wait [#allocation5], 64  }
  0x45   :  { %741 = vsyncadd [#allocation5], 4294967232 }
  0x46   :  { %742 = dma.done.wait [#allocation8], 2048  }
  0x47   :  { %743 = vsyncadd [#allocation8], 4294965248 }
  0x48   :  { %744 = dma.done.wait [#allocation11], 1024  }
  0x49   :  { %745 = vsyncadd [#allocation11], 4294966272  ;;  %v754_v0 = vmov 0.0   ;;  %vm755_vm0 = vmmov 0   ;;  %v606_v1 = vld [vmem:[#allocation7] sm:$0xff]   ;;  %v607_v2 = vld [vmem:[#allocation7 + $0x8] sm:$0xff]   ;;  %v198_v24 = vlaneseq }
  0x4a   :  { %537 = vmatprep.subr.bf16.mxu0 %v754_v0  ;;  %553 = vmatprep.mubr.msk.bf16.mxu0 %vm755_vm0, %v754_v0  ;;  %v608_v3 = vld [vmem:[#allocation7 + $0x10] sm:$0xff]   ;;  %v614_v4 = vld [vmem:[#allocation9] sm:$0xff]   ;;  %v609_v5 = vld [vmem:[#allocation7 + $0x18] sm:$0xff]   ;;  %s207_s16 = smul.u32 2246822507, %s913_s0  ;;  %s756_s13 = smov [#allocation12]  }
  0x4b   :  { %557 = vmatprep.subr.bf16.mxu1 %v754_v0  ;;  %573 = vmatprep.mubr.msk.bf16.mxu1 %vm755_vm0, %v754_v0  ;;  %v615_v6 = vld [vmem:[#allocation9 + $0x8] sm:$0xff]   ;;  %v610_v7 = vld [vmem:[#allocation7 + $0x20] sm:$0xff]   ;;  %v616_v8 = vld [vmem:[#allocation9 + $0x10] sm:$0xff]   ;;  %v199_v25 = vshrl.u32 %v198_v24, 7  ;;  %v203_v26 = vand.u32 127, %v198_v24  ;;  %s466_s14 = sshll.u32 %s756_s13, 4  ;;  %s467_s14 = int_to_ptr.vmem [resolvable:$true] %s466_s14 }
  0x4c   :  { %538 = vmatpush3.bf16.msra.mxu0 %v606_v1  ;;  %558 = vmatpush3.bf16.msra.mxu1 %v614_v4  ;;  %v611_v9 = vld [vmem:[#allocation7 + $0x28] sm:$0xff]   ;;  %v617_v10 = vld [vmem:[#allocation9 + $0x18] sm:$0xff]   ;;  %v612_v11 = vld [vmem:[#allocation7 + $0x30] sm:$0xff]   ;;  %v208_v30 = vstv %s207_s16  ;;  %p723_p5 = scmp.lt.s32.totalorder %s467_s14, %s467_s14 }
  0x4d   :  { %539 = vmatprep.subr.bf16.mxu0 %v754_v0  ;;  %559 = vmatprep.subr.bf16.mxu1 %v754_v0  ;;  %v618_v12 = vld [vmem:[#allocation9 + $0x20] sm:$0xff]   ;;  %v613_v13 = vld [vmem:[#allocation7 + $0x38] sm:$0xff]   ;;  %v619_v14 = vld [vmem:[#allocation9 + $0x28] sm:$0xff]   ;;  %v204_v27 = vmul.u32 128, %v199_v25 }
  0x4e   :  { %v83_v15 = vld [vmem:[#allocation4] sm:$0xf]  ;;  %v620_v16 = vld [vmem:[#allocation9 + $0x30] sm:$0xff]   ;;  %v622_v18 = vld [vmem:[#allocation10] sm:$0xff]  }
  0x4f   :  { %v621_v17 = vld [vmem:[#allocation9 + $0x38] sm:$0xff]   ;;  %v623_v19 = vld [vmem:[#allocation10 + $0x8] sm:$0xff]   ;;  %v624_v20 = vld [vmem:[#allocation10 + $0x10] sm:$0xff]   ;;  %v205_v28 = vadd.s32 %v204_v27, %v203_v26 }
  0x50   :  { %540 = vmatpush3.bf16.msra.mxu0 %v607_v2  ;;  %560 = vmatpush3.bf16.msra.mxu1 %v615_v6  ;;  %v625_v21 = vld [vmem:[#allocation10 + $0x18] sm:$0xff]   ;;  %v626_v22 = vld [vmem:[#allocation10 + $0x20] sm:$0xff]   ;;  %v627_v23 = vld [vmem:[#allocation10 + $0x28] sm:$0xff]  }
  0x51   :  { %541 = vmatprep.subr.bf16.mxu0 %v754_v0  ;;  %561 = vmatprep.subr.bf16.mxu1 %v754_v0  ;;  %v206_v29 = vmul.u32 2654435761, %v205_v28  ;;  %v477_v42 = vld [vmem:[%s916_s3] ss:$0 sm:$0xff]  ;;  %v628_v50 = vld [vmem:[#allocation10 + $0x30] sm:$0xff]  }
  0x52   :  { %v629_v51 = vld [vmem:[#allocation10 + $0x38] sm:$0xff]  }
  0x53   :  { %v209_v31 = vxor.u32 %v208_v30, %v206_v29  ;;  %v486_v62 = vld [vmem:[%s918_s5] ss:$0 sm:$0xff]  ;;  %s718_s5 = scalar_lea.vmem %s467_s14, 128 }
  0x54   :  { %542 = vmatpush3.bf16.msra.mxu0 %v608_v3  ;;  %562 = vmatpush3.bf16.msra.mxu1 %v616_v8  ;;  %v498_v6 = vld [vmem:[%s920_s7] ss:$0 sm:$0xff]  ;;  %p719_p4 = scmp.ne.s32.totalorder %s467_s14, %s718_s5  ;;  %p724_p6 = scmp.lt.s32.totalorder %s718_s5, %s718_s5 }
  0x55   :  { %543 = vmatprep.subr.bf16.mxu0 %v754_v0  ;;  %563 = vmatprep.subr.bf16.mxu1 %v754_v0  ;;  %v210_v32 = vxor.u32 461845907, %v209_v31  ;;  %v335_v52 = vxor.u32 1390208809, %v209_v31 }
  0x56   :  { %p725_p7 = por %p724_p6, %p723_p5 }
  0x57   :  { %v211_v33 = vshrl.u32 %v210_v32, 16  ;;  %v336_v53 = vshrl.u32 %v335_v52, 16 }
  0x58   :  { %544 = vmatpush3.bf16.msra.mxu0 %v609_v5  ;;  %564 = vmatpush3.bf16.msra.mxu1 %v617_v10  ;;  %p726_p8 = pnand %p725_p7, %p719_p4 }
  0x59   :  { %545 = vmatprep.subr.bf16.mxu0 %v754_v0  ;;  %565 = vmatprep.subr.bf16.mxu1 %v754_v0  ;;  %v212_v34 = vxor.u32 %v211_v33, %v210_v32  ;;  %v337_v54 = vxor.u32 %v336_v53, %v335_v52 }
  0x5b   :  { %v213_v35 = vmul.u32 2146121005, %v212_v34  ;;  %v338_v55 = vmul.u32 2146121005, %v337_v54 }
  0x5c   :  { %546 = vmatpush3.bf16.msra.mxu0 %v610_v7  ;;  %566 = vmatpush3.bf16.msra.mxu1 %v618_v12 }
  0x5d   :  { %547 = vmatprep.subr.bf16.mxu0 %v754_v0  ;;  %567 = vmatprep.subr.bf16.mxu1 %v754_v0  ;;  %v214_v36 = vshrl.u32 %v213_v35, 15  ;;  %v339_v56 = vshrl.u32 %v338_v55, 15 }
  0x5f   :  { %v215_v37 = vxor.u32 %v214_v36, %v213_v35  ;;  %v340_v57 = vxor.u32 %v339_v56, %v338_v55 }
  0x60   :  { %548 = vmatpush3.bf16.msra.mxu0 %v611_v9  ;;  %568 = vmatpush3.bf16.msra.mxu1 %v619_v14 }
  0x61   :  { %549 = vmatprep.subr.bf16.mxu0 %v754_v0  ;;  %569 = vmatprep.subr.bf16.mxu1 %v754_v0  ;;  %v216_v38 = vmul.u32 2221713035, %v215_v37  ;;  %v341_v58 = vmul.u32 2221713035, %v340_v57 }
  0x63   :  { %v217_v39 = vshrl.u32 %v216_v38, 16  ;;  %v342_v59 = vshrl.u32 %v341_v58, 16 }
  0x64   :  { %550 = vmatpush3.bf16.msra.mxu0 %v612_v11  ;;  %570 = vmatpush3.bf16.msra.mxu1 %v620_v16 }
  0x65   :  { %551 = vmatprep.subr.bf16.mxu0 %v754_v0  ;;  %571 = vmatprep.subr.bf16.mxu1 %v754_v0  ;;  %v218_v40 = vxor.u32 %v217_v39, %v216_v38  ;;  %v343_v60 = vxor.u32 %v342_v59, %v341_v58 }
  0x67   :  { %v219_v41 = vshrl.u32 %v218_v40, 1  ;;  %v344_v61 = vshrl.u32 %v343_v60, 1 }
  0x68   :  { %552 = vmatpush3.bf16.msra.mxu0 %v613_v13  ;;  %572 = vmatpush3.bf16.msra.mxu1 %v621_v17 }
  0x69   :  { %577 = vmatprep.subr.bf16.mxu0 %v754_v0  ;;  %vm220_vm1 = vcmp.ge.s32.totalorder %v219_v41, 1073741824  ;;  %vm345_vm3 = vcmp.ge.s32.totalorder %v344_v61, 1073741824 }
  0x6a   :  { %vm495_vm2 = vmpackc.low %vm220_vm1, %vm220_vm1 }
  0x6b   :  { %554 = vmatmul.mubr.bf16.vlgmr.msra.gmra.mrb[0].mxu0 %v83_v15  ;;  %vm507_vm4 = vmpackc.low %vm345_vm3, %vm345_vm3 }
  0x6c   :  { %593 = vmatprep.mubr.msk.bf16.mxu0 %vm755_vm0, %v754_v0  ;;  %578 = vmatpush3.bf16.msra.mxu0 %v622_v18 }
  0x6d   :  { %579 = vmatprep.subr.bf16.mxu0 %v754_v0 }
  0x70   :  { %580 = vmatpush3.bf16.msra.mxu0 %v623_v19 }
  0x71   :  { %581 = vmatprep.subr.bf16.mxu0 %v754_v0 }
  0x74   :  { %582 = vmatpush3.bf16.msra.mxu0 %v624_v20 }
  0x75   :  { %583 = vmatprep.subr.bf16.mxu0 %v754_v0 }
  0x78   :  { %584 = vmatpush3.bf16.msra.mxu0 %v625_v21 }
  0x79   :  { %585 = vmatprep.subr.bf16.mxu0 %v754_v0 }
  0x7c   :  { %586 = vmatpush3.bf16.msra.mxu0 %v626_v22 }
  0x7d   :  { %587 = vmatprep.subr.bf16.mxu0 %v754_v0 }
  0x80   :  { %588 = vmatpush3.bf16.msra.mxu0 %v627_v23 }
  0x81   :  { %589 = vmatprep.subr.bf16.mxu0 %v754_v0 }
  0x84   :  { %590 = vmatpush3.bf16.msra.mxu0 %v628_v50 }
  0x85   :  { %591 = vmatprep.subr.bf16.mxu0 %v754_v0 }
  0x88   :  { %592 = vmatpush3.bf16.msra.mxu0 %v629_v51 }
 0x13e   :  { %v189_v43 = vpop.f32.mrb[0].mxu0 }
 0x13f   :  { %v190_v44 = vadd.f32 %v477_v42, %v189_v43  ;;  %v555_v45 = vpop.f32.mrb[1].mxu0 }
 0x140   :  { %v192_v46 = vpop.f32.mrb[2].mxu0 }
 0x141   :  { %v195_v47 = vmax.f32 %v190_v44, 0.0  ;;  %v556_v48 = vpop.f32.mrb[3].mxu0 }
 0x143   :  { %v496_v49 = vpack.c.bf16 %v195_v47, %v195_v47 }
 0x145   :  { %574 = vmatmul.mubr.msk.bf16.vlgmr.msra.gmra.mrb[0].mxu1 %vm495_vm2, %v496_v49 }
 0x218   :  { %v328_v63 = vpop.f32.mrb[0].mxu1 }
 0x219   :  { %v329_v1 = vadd.f32 %v486_v62, %v328_v63  ;;  %v575_v2 = vpop.f32.mrb[1].mxu1 }
 0x21a   :  { %v331_v0 = vpop.f32.mrb[2].mxu1 }
 0x21b   :  { %v334_v3 = vmax.f32 %v329_v1, 0.0  ;;  %v576_v4 = vpop.f32.mrb[3].mxu1 }
 0x21d   :  { %v508_v5 = vpack.c.bf16 %v334_v3, %v334_v3 }
 0x21f   :  { %594 = vmatmul.mubr.msk.bf16.vlgmr.msra.gmra.mrb[4].mxu0 %vm507_vm4, %v508_v5 }
 0x2f2   :  { %v453_v7 = vpop.f32.mrb[4].mxu0 }
 0x2f3   :  { %v454_v8 = vadd.f32 %v498_v6, %v453_v7  ;;  %v595_v9 = vpop.f32.mrb[5].mxu0 }
 0x2f4   :  { %v456_v10 = vpop.f32.mrb[6].mxu0 }
 0x2f5   :  { %459 = vst [vmem:[#allocation12] sm:$0xff] %v454_v8  ;;  %v596_v11 = vpop.f32.mrb[7].mxu0 }
 0x2f6   :  { %729 = shalt.err (!%p726_p8)
}
 0x2f7   :  { %s730_s7 = scalar_lea.hbm %s921_s8, 128 }
 0x2f8   :  { %p731_p9 = scmp.ne.s32.totalorder %s921_s8, %s730_s7  ;;  %p734_p10 = scmp.lt.u32.totalorder %s730_s7, %s921_s8 }
 0x2fa   :  { %p736_p11 = pnand %p734_p10, %p731_p9 }
 0x2fc   :  { %739 = shalt.err (!%p736_p11)
}
 0x2fd   :  { %469 = dma.vmem_to_hbm [thread:$0]  %s467_s14, 128, %s921_s8, [#allocation6]  }
 0x2fe   :  { %746 = dma.done.wait [#allocation6], 128  }
 0x2ff   :  { %747 = vsyncadd [#allocation6], 4294967168 }
 0x300   :  { %473 = vsyncpa [#allocation5], 1 }
 0x301   :  { %474 = vsyncpa [#allocation8], 1 }
 0x302   :  { %475 = vsyncpa [#allocation11], 1 }
 0x303   :  { %476 = vsyncpa [#allocation6], 1 }

</bundles_post_ra>
